<compile_context>
chip_gen: v7x
topology: tpu7x:2x2x1
jax: 0.10.0
libtpu: 0.0.40
codegen_flags: <defaults>
</compile_context>

<pallas_src>
import functools

import jax
import jax.numpy as jnp
from jax.experimental import pallas as pl
from jax.experimental.pallas import tpu as pltpu


def _fused_sage_kernel(adj_hbm, x_hbm, inv_deg_ref, w_ref, b_ref, o_ref,
                       adj_vmem, h_ref, xwl_ref, xwr_ref, dma_sems, *,
                       num_layers, tile_n, f_pad, n_tiles):
    """Grid = (layer, node_tile), both 'arbitrary' (sequential).

    Scratch:
      adj_vmem (N, N)     int8 : resident 0/1 adjacency (DMA'd from HBM once)
      h_ref    (N, F_PAD) bf16 : current layer-input activations
      xwl_ref  (N, F_PAD) bf16 : h @ W_l   (this layer, all nodes)
      xwr_ref  (N, F_PAD) bf16 : h @ W_r   (bias added in f32 epilogue)
    The aggregation reads only the xwl/xwr snapshot (+ adjacency), so the new
    activations can be written back into h_ref in place, tile by tile.
    """
    l = pl.program_id(0)
    i = pl.program_id(1)

    # One-time loads: adjacency -> resident VMEM, input features -> h scratch.
    @pl.when((l == 0) & (i == 0))
    def _load():
        a_cp = pltpu.make_async_copy(adj_hbm, adj_vmem, dma_sems.at[0])
        x_cp = pltpu.make_async_copy(x_hbm, h_ref, dma_sems.at[1])
        a_cp.start()
        x_cp.start()
        x_cp.wait()
        a_cp.wait()

    # Once per layer: projection h @ [W_l | W_r] (K = F_PAD), chunked over
    # node tiles so no (N, 2*F_PAD) f32 transient is materialized.
    @pl.when(i == 0)
    def _project():
        w = w_ref[0]                                    # (f_pad, 2*f_pad) bf16

        def body(t, carry):
            r0 = pl.multiple_of(t * tile_n, tile_n)
            xw = jnp.dot(h_ref[pl.ds(r0, tile_n), :], w,
                         preferred_element_type=jnp.float32)
            xwl_ref[pl.ds(r0, tile_n), :] = xw[:, :f_pad].astype(jnp.bfloat16)
            xwr_ref[pl.ds(r0, tile_n), :] = xw[:, f_pad:].astype(jnp.bfloat16)
            return carry

        jax.lax.fori_loop(0, n_tiles, body, 0, unroll=True)

    # Per-tile aggregation on the MXU: (tile_n, N) @ (N, F_PAD), f32 epilogue.
    row0 = pl.multiple_of(i * tile_n, tile_n)
    a_tile = adj_vmem[pl.ds(row0, tile_n), :].astype(jnp.bfloat16)
    agg = jnp.dot(a_tile, xwl_ref[...], preferred_element_type=jnp.float32)
    out = (inv_deg_ref[pl.ds(row0, tile_n), :] * agg
           + xwr_ref[pl.ds(row0, tile_n), :].astype(jnp.float32)
           + b_ref[0])

    # ReLU + store next-layer activations (dropout is eval-mode identity).
    @pl.when(l + 1 < num_layers)
    def _store_h():
        h_ref[pl.ds(row0, tile_n), :] = jnp.maximum(out, 0.0).astype(jnp.bfloat16)

    # Only the last layer writes the resident output block (single writeback).
    @pl.when(l == num_layers - 1)
    def _store_out():
        o_ref[pl.ds(row0, tile_n), :] = out


def sage_forward(x, adj01, params, *, tile_n=128, f_pad=128):
    """Fused SAGE forward: convs[:-1] with ReLU, final conv with no activation.

    adj01 is the dense binary adjacency: adj01[i, j] = 1 iff j in N(i).
    """
    n, in_ch = x.shape
    num_layers = len(params)
    out_ch = params[-1][0].shape[1]
    assert n % tile_n == 0, (n, tile_n)
    assert max([in_ch] + [w.shape[1] for (w, _, _) in params]) <= f_pad
    n_tiles = n // tile_n

    # Exact 0/1 adjacency as int8 (HBM bytes halved vs bf16, quartered vs f32).
    adj_i8 = adj01.astype(jnp.int8)
    deg = jnp.sum(adj01.astype(jnp.float32), axis=1, keepdims=True)
    inv_deg = 1.0 / jnp.maximum(deg, 1.0)      # deg-0 rows aggregate to 0 (PyG mean)

    # Lane-dense padding of features; bf16 operands for the MXU.
    x_pad = jnp.zeros((n, f_pad), jnp.bfloat16).at[:, :in_ch].set(
        x.astype(jnp.bfloat16))

    # Stack per-layer weights into (L, F_PAD, 2*F_PAD):
    #   [:, :, :F_PAD] = W_l (padded), [:, :, F_PAD:] = W_r (padded).
    w_cat = jnp.zeros((num_layers, f_pad, 2 * f_pad), jnp.float32)
    b_cat = jnp.zeros((num_layers, 1, f_pad), jnp.float32)
    for li, (w_l, w_r, b) in enumerate(params):
        f_in, f_out = w_l.shape
        w_cat = w_cat.at[li, :f_in, :f_out].set(w_l)
        w_cat = w_cat.at[li, :f_in, f_pad:f_pad + f_out].set(w_r)
        b_cat = b_cat.at[li, 0, :f_out].set(b.reshape(-1))
    w_cat = w_cat.astype(jnp.bfloat16)

    kernel = functools.partial(_fused_sage_kernel, num_layers=num_layers,
                               tile_n=tile_n, f_pad=f_pad, n_tiles=n_tiles)

    out_pad = pl.pallas_call(
        kernel,
        out_shape=jax.ShapeDtypeStruct((n, f_pad), jnp.float32),
        grid_spec=pltpu.PrefetchScalarGridSpec(
            num_scalar_prefetch=0,
            grid=(num_layers, n_tiles),
            in_specs=[
                # adjacency stays in HBM; DMA'd to resident VMEM once in-kernel
                pl.BlockSpec(memory_space=pl.ANY),
                # input features stay in HBM; DMA'd straight into h scratch
                pl.BlockSpec(memory_space=pl.ANY),
                # per-row 1/deg, resident (constant block index -> one fetch)
                pl.BlockSpec((n, 1), lambda l, i: (0, 0)),
                # per-layer concatenated weights [W_l | W_r]
                pl.BlockSpec((1, f_pad, 2 * f_pad), lambda l, i: (l, 0, 0)),
                # per-layer bias (f32, epilogue add)
                pl.BlockSpec((1, 1, f_pad), lambda l, i: (l, 0, 0)),
            ],
            # Resident output block: written back to HBM exactly once.
            out_specs=pl.BlockSpec((n, f_pad), lambda l, i: (0, 0)),
            scratch_shapes=[
                pltpu.VMEM((n, n), jnp.int8),            # resident adjacency
                pltpu.VMEM((n, f_pad), jnp.bfloat16),    # h   (activations)
                pltpu.VMEM((n, f_pad), jnp.bfloat16),    # xwl = h @ W_l
                pltpu.VMEM((n, f_pad), jnp.bfloat16),    # xwr = h @ W_r
                pltpu.SemaphoreType.DMA((2,)),
            ]),
        compiler_params=pltpu.CompilerParams(
            # Both axes must run sequentially on one core: node tiles of layer
            # l feed (via the h/xwl/xwr scratch) every tile of layer l+1.
            dimension_semantics=("arbitrary", "arbitrary"),
            vmem_limit_bytes=32 * 1024 * 1024),
    )(adj_i8, x_pad, inv_deg, w_cat, b_cat)

    return out_pad[:, :out_ch]


def init_sage_params(key, in_channels, hidden_channels, out_channels,
                     num_layers):
    """Deterministic parameter init matching SAGEConv shapes:
    each layer has lin_l (with bias) and lin_r (no bias)."""
    dims = ([in_channels]
            + [hidden_channels] * (num_layers - 1)
            + [out_channels])
    params = []
    for li in range(num_layers):
        f_in, f_out = dims[li], dims[li + 1]
        key, k1, k2, k3 = jax.random.split(key, 4)
        scale = 1.0 / jnp.sqrt(jnp.float32(f_in))
        w_l = jax.random.uniform(k1, (f_in, f_out), jnp.float32,
                                 minval=-scale, maxval=scale)
        w_r = jax.random.uniform(k2, (f_in, f_out), jnp.float32,
                                 minval=-scale, maxval=scale)
        b = jax.random.uniform(k3, (1, f_out), jnp.float32,
                               minval=-scale, maxval=scale)
        params.append((w_l, w_r, b))
    return params


if __name__ == "__main__":
    key = jax.random.PRNGKey(0)

    # Small, TPU-friendly shapes.
    N = 256               # number of graph nodes
    IN_CH = 32
    HIDDEN_CH = 32
    OUT_CH = 16
    NUM_LAYERS = 3
    DROPOUT = 0.5         # identity at inference (no-op in this forward)

    key, k_x, k_adj = jax.random.split(key, 3)

    # Node features.
    x = jax.random.normal(k_x, (N, IN_CH), jnp.float32)

    # Random sparse-ish 0/1 adjacency, no self loops.
    adj01 = (jax.random.uniform(k_adj, (N, N)) < 0.1).astype(jnp.float32)
    adj01 = adj01 * (1.0 - jnp.eye(N, dtype=jnp.float32))

    params = init_sage_params(key, IN_CH, HIDDEN_CH, OUT_CH, NUM_LAYERS)

    out = sage_forward(x, adj01, params, tile_n=128)
    out = jax.block_until_ready(out)

    assert out.shape == (N, OUT_CH), out.shape
    assert out.dtype == jnp.float32, out.dtype
    assert bool(jnp.all(jnp.isfinite(out)))

    deg = jnp.sum(adj01, axis=1, keepdims=True)
    inv_deg = 1.0 / jnp.maximum(deg, 1.0)

    # (1) Reference with the kernel's bf16 operand quantization (tight-ish tol).
    a01_bf = adj01.astype(jnp.bfloat16)
    h = x.astype(jnp.bfloat16)
    ref_q = None
    for li, (w_l, w_r, b) in enumerate(params):
        xwl = jnp.dot(h, w_l.astype(jnp.bfloat16),
                      preferred_element_type=jnp.float32).astype(jnp.bfloat16)
        xwr = jnp.dot(h, w_r.astype(jnp.bfloat16),
                      preferred_element_type=jnp.float32).astype(jnp.bfloat16)
        agg = jnp.dot(a01_bf, xwl, preferred_element_type=jnp.float32)
        ref_q = inv_deg * agg + xwr.astype(jnp.float32) + b
        if li < NUM_LAYERS - 1:
            h = jnp.maximum(ref_q, 0.0).astype(jnp.bfloat16)
    assert jnp.allclose(out, ref_q, atol=5e-2, rtol=5e-2), (
        float(jnp.max(jnp.abs(out - ref_q))))

    # (2) Full-f32 reference (true module semantics); loose tolerance since
    #     the kernel uses bf16 operands with f32 accumulation.
    a_norm = adj01 * inv_deg
    ref = x
    for li, (w_l, w_r, b) in enumerate(params):
        ref = a_norm @ (ref @ w_l) + ref @ w_r + b
        if li < NUM_LAYERS - 1:
            ref = jnp.maximum(ref, 0.0)
    assert jnp.allclose(out, ref, atol=1e-1, rtol=1e-1), (
        float(jnp.max(jnp.abs(out - ref))))

    print("KERNEL_OK")
</pallas_src>

<mosaic_0001>
module attributes {stable_mosaic.version = 11 : i64} {
  func.func @_fused_sage_kernel(%arg0: i32, %arg1: i32, %arg2: memref<256x256xi8, #tpu.memory_space<any>>, %arg3: memref<256x128xbf16, #tpu.memory_space<any>>, %arg4: memref<256x1xf32, #tpu.memory_space<vmem>>, %arg5: memref<1x128x256xbf16, #tpu.memory_space<vmem>>, %arg6: memref<1x1x128xf32, #tpu.memory_space<vmem>>, %arg7: memref<256x128xf32, #tpu.memory_space<vmem>>, %arg8: memref<256x256xi8, #tpu.memory_space<vmem>>, %arg9: memref<256x128xbf16, #tpu.memory_space<vmem>>, %arg10: memref<256x128xbf16, #tpu.memory_space<vmem>>, %arg11: memref<256x128xbf16, #tpu.memory_space<vmem>>, %arg12: memref<2x!tpu.dma_semaphore, #tpu.memory_space<semaphore_mem>>) attributes {dimension_semantics = [#tpu.dimension_semantics<arbitrary>, #tpu.dimension_semantics<arbitrary>], iteration_bounds = array<i64: 3, 2>, scalar_prefetch = 0 : i64, scratch_operands = 5 : i64, tpu.core_type = #tpu.core_type<tc>, window_params = [{}, {}, {pipeline_mode = #tpu.pipeline_mode<synchronous>, transform_indices = @transform_2, window_bounds = array<i64: 256, 1>}, {transform_indices = @transform_3, window_bounds = array<i64: 1, 128, 256>}, {transform_indices = @transform_4, window_bounds = array<i64: 1, 1, 128>}, {pipeline_mode = #tpu.pipeline_mode<synchronous>, transform_indices = @transform_5, window_bounds = array<i64: 256, 128>}]} {
    %c0_i32 = arith.constant 0 : i32
    %0 = arith.cmpi eq, %arg0, %c0_i32 : i32
    %c0_i32_0 = arith.constant 0 : i32
    %1 = arith.cmpi eq, %arg1, %c0_i32_0 : i32
    %2 = arith.andi %0, %1 : i1
    %3 = arith.extui %2 : i1 to i32
    %c0_i32_1 = arith.constant 0 : i32
    %4 = arith.cmpi ne, %3, %c0_i32_1 : i32
    scf.if %4 {
      %c0_i32_13 = arith.constant 0 : i32
      %34 = tpu.memref_slice %arg12[%c0_i32_13] : memref<2x!tpu.dma_semaphore, #tpu.memory_space<semaphore_mem>> -> memref<1x!tpu.dma_semaphore, #tpu.memory_space<semaphore_mem>>
      %35 = tpu.memref_squeeze %34 : memref<1x!tpu.dma_semaphore, #tpu.memory_space<semaphore_mem>> -> memref<!tpu.dma_semaphore, #tpu.memory_space<semaphore_mem>>
      tpu.enqueue_dma source(%arg2 : memref<256x256xi8, #tpu.memory_space<any>>) target(%arg8 : memref<256x256xi8, #tpu.memory_space<vmem>>) target_semaphore(%35 : memref<!tpu.dma_semaphore, #tpu.memory_space<semaphore_mem>>)
      %c1_i32_14 = arith.constant 1 : i32
      %36 = tpu.memref_slice %arg12[%c1_i32_14] : memref<2x!tpu.dma_semaphore, #tpu.memory_space<semaphore_mem>> -> memref<1x!tpu.dma_semaphore, #tpu.memory_space<semaphore_mem>>
      %37 = tpu.memref_squeeze %36 : memref<1x!tpu.dma_semaphore, #tpu.memory_space<semaphore_mem>> -> memref<!tpu.dma_semaphore, #tpu.memory_space<semaphore_mem>>
      tpu.enqueue_dma source(%arg3 : memref<256x128xbf16, #tpu.memory_space<any>>) target(%arg9 : memref<256x128xbf16, #tpu.memory_space<vmem>>) target_semaphore(%37 : memref<!tpu.dma_semaphore, #tpu.memory_space<semaphore_mem>>)
      %c1_i32_15 = arith.constant 1 : i32
      %38 = tpu.memref_slice %arg12[%c1_i32_15] : memref<2x!tpu.dma_semaphore, #tpu.memory_space<semaphore_mem>> -> memref<1x!tpu.dma_semaphore, #tpu.memory_space<semaphore_mem>>
      %39 = tpu.memref_squeeze %38 : memref<1x!tpu.dma_semaphore, #tpu.memory_space<semaphore_mem>> -> memref<!tpu.dma_semaphore, #tpu.memory_space<semaphore_mem>>
      tpu.wait_dma2 semaphore(%39 : memref<!tpu.dma_semaphore, #tpu.memory_space<semaphore_mem>>) src(%arg3 : memref<256x128xbf16, #tpu.memory_space<any>>) dst(%arg9 : memref<256x128xbf16, #tpu.memory_space<vmem>>)
      %c0_i32_16 = arith.constant 0 : i32
      %40 = tpu.memref_slice %arg12[%c0_i32_16] : memref<2x!tpu.dma_semaphore, #tpu.memory_space<semaphore_mem>> -> memref<1x!tpu.dma_semaphore, #tpu.memory_space<semaphore_mem>>
      %41 = tpu.memref_squeeze %40 : memref<1x!tpu.dma_semaphore, #tpu.memory_space<semaphore_mem>> -> memref<!tpu.dma_semaphore, #tpu.memory_space<semaphore_mem>>
      tpu.wait_dma2 semaphore(%41 : memref<!tpu.dma_semaphore, #tpu.memory_space<semaphore_mem>>) src(%arg2 : memref<256x256xi8, #tpu.memory_space<any>>) dst(%arg8 : memref<256x256xi8, #tpu.memory_space<vmem>>)
    } else {
    }
    %c0_i32_2 = arith.constant 0 : i32
    %5 = arith.cmpi eq, %arg1, %c0_i32_2 : i32
    %6 = arith.extui %5 : i1 to i32
    %c0_i32_3 = arith.constant 0 : i32
    %7 = arith.cmpi ne, %6, %c0_i32_3 : i32
    scf.if %7 {
      %c0_13 = arith.constant 0 : index
      %c0_14 = arith.constant 0 : index
      %c0_15 = arith.constant 0 : index
      %34 = vector.load %arg5[%c0_13, %c0_14, %c0_15] : memref<1x128x256xbf16, #tpu.memory_space<vmem>>, vector<1x128x256xbf16>
      %35 = vector.shape_cast %34 : vector<1x128x256xbf16> to vector<128x256xbf16>
      %c0_i32_16 = arith.constant 0 : i32
      %c128_i32_17 = arith.constant 128 : i32
      %36 = arith.muli %c0_i32_16, %c128_i32_17 : i32
      %37 = tpu.assume_multiple %36, 128 : i32
      %38 = arith.index_cast %37 : i32 to index
      %c0_18 = arith.constant 0 : index
      %39 = vector.load %arg9[%38, %c0_18] : memref<256x128xbf16, #tpu.memory_space<vmem>>, vector<128x128xbf16>
      %cst_19 = arith.constant dense<0.000000e+00> : vector<128x256xf32>
      %40 = tpu.matmul %39, %35, %cst_19 {dimension_numbers = #tpu.dot_dimension_numbers<[1], [0], [0], [1], [0, 0, 1, 1], [], []>} : vector<128x128xbf16>, vector<128x256xbf16>, vector<128x256xf32> -> vector<128x256xf32>
      %41 = vector.extract_strided_slice %40 {offsets = [0, 0], sizes = [128, 128], strides = [1, 1]} : vector<128x256xf32> to vector<128x128xf32>
      %42 = arith.truncf %41 : vector<128x128xf32> to vector<128x128xbf16>
      %43 = arith.index_cast %37 : i32 to index
      %c0_20 = arith.constant 0 : index
      %44 = vector.load %arg10[%43, %c0_20] : memref<256x128xbf16, #tpu.memory_space<vmem>>, vector<128x128xbf16>
      tpu.vector_store %arg10[%43, %c0_20], %42 {strides = array<i32>} : memref<256x128xbf16, #tpu.memory_space<vmem>>, vector<128x128xbf16>,
      %45 = vector.extract_strided_slice %40 {offsets = [0, 128], sizes = [128, 128], strides = [1, 1]} : vector<128x256xf32> to vector<128x128xf32>
      %46 = arith.truncf %45 : vector<128x128xf32> to vector<128x128xbf16>
      %47 = arith.index_cast %37 : i32 to index
      %c0_21 = arith.constant 0 : index
      %48 = vector.load %arg11[%47, %c0_21] : memref<256x128xbf16, #tpu.memory_space<vmem>>, vector<128x128xbf16>
      tpu.vector_store %arg11[%47, %c0_21], %46 {strides = array<i32>} : memref<256x128xbf16, #tpu.memory_space<vmem>>, vector<128x128xbf16>,
      %c1_i32_22 = arith.constant 1 : i32
      %c128_i32_23 = arith.constant 128 : i32
      %49 = arith.muli %c1_i32_22, %c128_i32_23 : i32
      %50 = tpu.assume_multiple %49, 128 : i32
      %51 = arith.index_cast %50 : i32 to index
      %c0_24 = arith.constant 0 : index
      %52 = vector.load %arg9[%51, %c0_24] : memref<256x128xbf16, #tpu.memory_space<vmem>>, vector<128x128xbf16>
      %cst_25 = arith.constant dense<0.000000e+00> : vector<128x256xf32>
      %53 = tpu.matmul %52, %35, %cst_25 {dimension_numbers = #tpu.dot_dimension_numbers<[1], [0], [0], [1], [0, 0, 1, 1], [], []>} : vector<128x128xbf16>, vector<128x256xbf16>, vector<128x256xf32> -> vector<128x256xf32>
      %54 = vector.extract_strided_slice %53 {offsets = [0, 0], sizes = [128, 128], strides = [1, 1]} : vector<128x256xf32> to vector<128x128xf32>
      %55 = arith.truncf %54 : vector<128x128xf32> to vector<128x128xbf16>
      %56 = arith.index_cast %50 : i32 to index
      %c0_26 = arith.constant 0 : index
      %57 = vector.load %arg10[%56, %c0_26] : memref<256x128xbf16, #tpu.memory_space<vmem>>, vector<128x128xbf16>
      tpu.vector_store %arg10[%56, %c0_26], %55 {strides = array<i32>} : memref<256x128xbf16, #tpu.memory_space<vmem>>, vector<128x128xbf16>,
      %58 = vector.extract_strided_slice %53 {offsets = [0, 128], sizes = [128, 128], strides = [1, 1]} : vector<128x256xf32> to vector<128x128xf32>
      %59 = arith.truncf %58 : vector<128x128xf32> to vector<128x128xbf16>
      %60 = arith.index_cast %50 : i32 to index
      %c0_27 = arith.constant 0 : index
      %61 = vector.load %arg11[%60, %c0_27] : memref<256x128xbf16, #tpu.memory_space<vmem>>, vector<128x128xbf16>
      tpu.vector_store %arg11[%60, %c0_27], %59 {strides = array<i32>} : memref<256x128xbf16, #tpu.memory_space<vmem>>, vector<128x128xbf16>,
      %c2_i32_28 = arith.constant 2 : i32
    } else {
    }
    %c128_i32 = arith.constant 128 : i32
    %8 = arith.muli %arg1, %c128_i32 : i32
    %9 = tpu.assume_multiple %8, 128 : i32
    %10 = arith.index_cast %9 : i32 to index
    %c0 = arith.constant 0 : index
    %11 = vector.load %arg8[%10, %c0] : memref<256x256xi8, #tpu.memory_space<vmem>>, vector<128x256xi8>
    %12 = arith.sitofp %11 : vector<128x256xi8> to vector<128x256xbf16>
    %c0_4 = arith.constant 0 : index
    %c0_5 = arith.constant 0 : index
    %13 = vector.load %arg10[%c0_4, %c0_5] : memref<256x128xbf16, #tpu.memory_space<vmem>>, vector<256x128xbf16>
    %cst = arith.constant dense<0.000000e+00> : vector<128x128xf32>
    %14 = tpu.matmul %12, %13, %cst {dimension_numbers = #tpu.dot_dimension_numbers<[1], [0], [0], [1], [0, 0, 1, 1], [], []>} : vector<128x256xbf16>, vector<256x128xbf16>, vector<128x128xf32> -> vector<128x128xf32>
    %15 = arith.index_cast %9 : i32 to index
    %c0_6 = arith.constant 0 : index
    %16 = vector.load %arg4[%15, %c0_6] : memref<256x1xf32, #tpu.memory_space<vmem>>, vector<128x1xf32>
    %17 = vector.broadcast %16 : vector<128x1xf32> to vector<128x128xf32>
    %18 = arith.mulf %17, %14 : vector<128x128xf32>
    %19 = arith.index_cast %9 : i32 to index
    %c0_7 = arith.constant 0 : index
    %20 = vector.load %arg11[%19, %c0_7] : memref<256x128xbf16, #tpu.memory_space<vmem>>, vector<128x128xbf16>
    %21 = arith.extf %20 : vector<128x128xbf16> to vector<128x128xf32>
    %22 = arith.addf %18, %21 : vector<128x128xf32>
    %c0_8 = arith.constant 0 : index
    %c0_9 = arith.constant 0 : index
    %c0_10 = arith.constant 0 : index
    %23 = vector.load %arg6[%c0_8, %c0_9, %c0_10] : memref<1x1x128xf32, #tpu.memory_space<vmem>>, vector<1x1x128xf32>
    %24 = vector.shape_cast %23 : vector<1x1x128xf32> to vector<1x128xf32>
    %25 = vector.broadcast %24 : vector<1x128xf32> to vector<128x128xf32>
    %26 = arith.addf %22, %25 : vector<128x128xf32>
    %c1_i32 = arith.constant 1 : i32
    %27 = arith.addi %arg0, %c1_i32 : i32
    %c3_i32 = arith.constant 3 : i32
    %28 = arith.cmpi slt, %27, %c3_i32 : i32
    %29 = arith.extui %28 : i1 to i32
    %c0_i32_11 = arith.constant 0 : i32
    %30 = arith.cmpi ne, %29, %c0_i32_11 : i32
    scf.if %30 {
      %cst_13 = arith.constant 0.000000e+00 : f32
      %34 = vector.broadcast %cst_13 : f32 to vector<128x128xf32>
      %35 = arith.maximumf %26, %34 : vector<128x128xf32>
      %36 = arith.truncf %35 : vector<128x128xf32> to vector<128x128xbf16>
      %37 = arith.index_cast %9 : i32 to index
      %c0_14 = arith.constant 0 : index
      %38 = vector.load %arg9[%37, %c0_14] : memref<256x128xbf16, #tpu.memory_space<vmem>>, vector<128x128xbf16>
      tpu.vector_store %arg9[%37, %c0_14], %36 {strides = array<i32>} : memref<256x128xbf16, #tpu.memory_space<vmem>>, vector<128x128xbf16>,
    } else {
    }
    %c2_i32 = arith.constant 2 : i32
    %31 = arith.cmpi eq, %arg0, %c2_i32 : i32
    %32 = arith.extui %31 : i1 to i32
    %c0_i32_12 = arith.constant 0 : i32
    %33 = arith.cmpi ne, %32, %c0_i32_12 : i32
    scf.if %33 {
      %34 = arith.index_cast %9 : i32 to index
      %c0_13 = arith.constant 0 : index
      %35 = vector.load %arg7[%34, %c0_13] : memref<256x128xf32, #tpu.memory_space<vmem>>, vector<128x128xf32>
      tpu.vector_store %arg7[%34, %c0_13], %26 {strides = array<i32>} : memref<256x128xf32, #tpu.memory_space<vmem>>, vector<128x128xf32>,
    } else {
    }
    return
  }
  func.func @transform_2(%arg0: i32, %arg1: i32) -> (i32, i32) {
    %c0_i32 = arith.constant 0 : i32
    %c0_i32_0 = arith.constant 0 : i32
    %c0_i32_1 = arith.constant 0 : i32
    return %c0_i32, %c0_i32_0 : i32, i32
  }
  func.func @transform_3(%arg0: i32, %arg1: i32) -> (i32, i32, i32) {
    %c0_i32 = arith.constant 0 : i32
    %c0_i32_0 = arith.constant 0 : i32
    %c0_i32_1 = arith.constant 0 : i32
    return %arg0, %c0_i32, %c0_i32_0 : i32, i32, i32
  }
  func.func @transform_4(%arg0: i32, %arg1: i32) -> (i32, i32, i32) {
    %c0_i32 = arith.constant 0 : i32
    %c0_i32_0 = arith.constant 0 : i32
    %c0_i32_1 = arith.constant 0 : i32
    return %arg0, %c0_i32, %c0_i32_0 : i32, i32, i32
  }
  func.func @transform_5(%arg0: i32, %arg1: i32) -> (i32, i32) {
    %c0_i32 = arith.constant 0 : i32
    %c0_i32_0 = arith.constant 0 : i32
    %c0_i32_1 = arith.constant 0 : i32
    return %c0_i32, %c0_i32_0 : i32, i32
  }
}

</mosaic_0001>

<bundles_post_ra>
// kernel: tpu_custom_call.1
= control target key start
LH: loop header
LB: loop body
LE: loop exit
PB: predicated region body
PF: predicated region fallthrough
CT: control target
= control target key end

     0   :  { %10 = vsyncpa [#allocation8], 0  ;;  %s2136_s0 = inlined_call_operand.vmem [shape: s8[256,256], index: 0, kind: input, shape index: {}]   ;;  %s2137_s1 = inlined_call_operand.vmem [shape: bf16[256,128], index: 1, kind: input, shape index: {}]   ;;  %s2138_s2 = inlined_call_operand.vmem [shape: f32[256,1], index: 2, kind: input, shape index: {}]   ;;  %s2139_s3 = inlined_call_operand.hbm [shape: bf16[3,128,256], index: 3, kind: input, shape index: {}]   ;;  %s2140_s4 = inlined_call_operand.vmem [shape: f32[3,1,128], index: 4, kind: input, shape index: {}]   ;;  %s2141_s5 = inlined_call_operand.hbm [shape: f32[256,128], index: 5, kind: output, shape index: {}]  }
   0x1   :  { %12 = vsyncpa [#allocation8 + $0x1], 0 }
   0x2   :  { %13 = vsyncpa [#allocation9], 0  ;;  %s1676_s18 = smov 0   ;;  %s1678_s19 = smov 0  }
   0x3   :  { %s1680_s20 = smov 0   ;;  %s1682_s21 = smov 0  }
   0x4   :  { %s1684_s22 = smov 0   ;;  %s1686_s23 = smov 0  }
   0x5   :  { %s1688_s24 = smov 0   ;;  %s1690_s25 = smov 0  }
   0x6 LB: > { %s1275_s26 = sadd.s32 4294967295, %s1636_s25   ;;  %s28_s27 = sadd.s32 1, %s1628_s23  ;;  %s1636_s25 = sphi %s1690_s25, %s19_s25   ;;  %s1632_s24 = sphi %s1688_s24, %s2152_s24   ;;  %s1628_s23 = sphi %s1686_s23, %s2151_s23   ;;  %s1624_s22 = sphi %s1684_s22, %s2150_s22   ;;  %s1620_s21 = sphi %s1682_s21, %s2149_s21   ;;  %s1616_s20 = sphi %s1680_s20, %s2148_s20   ;;  %s1612_s19 = sphi %s1678_s19, %s2147_s19   ;;  %s1608_s18 = sphi %s1676_s18, %s2146_s18  }
   0x7   : > { %p29_p0 = scmp.ge.s32.totalorder %s28_s27, 2  ;;  %s31_s28 = sadd.s32 1, %s1632_s24 }
   0x8   : > { %s59_s29 = sadd.s32 1, %s1616_s20  ;;  %p66_p1 = scmp.ne.s32.totalorder %s1616_s20, %s1612_s19 }
   0x9   : > { %s2154_s27 = smov (%p29_p0, %s28_s27), 0  ;;  %s2156_s28 = smov (!%p29_p0, %s31_s28), %s1632_s24 }
   0xa   : > { %p67_p2 = scmp.eq.s32.totalorder %s1636_s25, 0  ;;  %p72_p3 = scmp.ne.s32.totalorder %s1612_s19, %s1608_s18 }
   0xb   : > { %p33_p4 = scmp.ge.s32.totalorder %s2156_s28, 3  ;;  %p73_p5 = scmp.eq.s32.totalorder %s1275_s26, 0 }
   0xc   : > { %p1727_p6 = por %p67_p2, %p66_p1  ;;  %p1406_p8 = scmp.lt.s32.totalorder %s1636_s25, 6 }
   0xd   : > { %s2158_s28 = smov (%p33_p4, %s2156_s28), 0  ;;  %p1733_p7 = por %p73_p5, %p72_p3 }
   0xe   : > { %s56_s7 = ssub.s32 %s1632_s24, %s2158_s28  ;;  %s146_s8 = sand.u32 1, %s1616_s20  }
   0xf   : > { %p57_p9 = scmp.eq.s32.totalorder %s56_s7, 0  ;;  %s1278_s9 = sshll.u32 %s146_s8, 7 }
  0x10   : > { %s1314_s10 = sshll.u32 %s1632_s24, 11  ;;  %s150_s15 = scalar_lea.vmem [#allocation7], %s1278_s9 }
  0x11   : > { %s1743_s11 = scalar_select %p57_p9, %s1616_s20, %s59_s29  }
  0x12   : > { %s1748_s14 = scalar_lea.hbm %s2139_s3, %s1314_s10  ;;  %s157_s16 = sshll.u32 %s150_s15, 4  ;;  %s1756_s16 = int_to_ptr.vmem [resolvable:$true] %s157_s16 }
  0x13   : > { %p1752_p10 = pnand %p1406_p8, %p1727_p6  ;;  %s1758_s18 = scalar_lea.sflag [#allocation8], %s146_s8 }
  0x14   : > { %s1506_s29 = scalar_lea.hbm %s1748_s14, 2048  ;;  %s1511_s9 = scalar_lea.hbm %s2139_s3, 6144 }
  0x15   : > { %p1507_p11 = scmp.ne.s32.totalorder %s1748_s14, %s1506_s29  ;;  %p1508_p12 = pneg %p1752_p10 }
  0x16   : > { %p1512_p1 = scmp.lt.u32.totalorder %s1748_s14, %s2139_s3  ;;  %p1513_p2 = scmp.lt.u32.totalorder %s1511_s9, %s1506_s29 }
  0x17   : > { %p1509_p13 = pnand %p1508_p12, %p1507_p11  ;;  %p1515_p4 = scmp.lt.u32.totalorder %s1506_s29, %s1748_s14 }
  0x18   : > { %p1514_p3 = por %p1513_p2, %p1512_p1 }
  0x19   : > { %p1510_p0 = pneg %p1509_p13 }
  0x1a   : > { %p1516_p5 = por %p1515_p4, %p1514_p3 }
  0x1c   : > { %p1517_p6 = pnand %p1516_p5, %p1510_p0 }
  0x1e   : > { %1520 = shalt.err (!%p1517_p6)
}
  0x1f   : > { %s1521_s8 = scalar_lea.vmem %s1756_s16, 2048  ;;  %s1638_s13 = smov [#allocation7]  }
  0x20   : > { %p1522_p8 = scmp.ne.s32.totalorder %s1756_s16, %s1521_s8  ;;  %s1526_s15 = sshll.u32 %s1638_s13, 4  ;;  %s1527_s15 = int_to_ptr.vmem [resolvable:$false] %s1526_s15 }
  0x21   : > { %s1528_s7 = scalar_lea.vmem %s1527_s15, 4096  ;;  %p1529_p13 = scmp.lt.s32.totalorder %s1756_s16, %s1527_s15 }
  0x22   : > { %p1524_p9 = pnand %p1522_p8, %p1508_p12  ;;  %p1530_p1 = scmp.lt.s32.totalorder %s1528_s7, %s1521_s8 }
  0x24   : > { %p1525_p11 = pneg %p1524_p9  ;;  %p1531_p2 = por %p1530_p1, %p1529_p13 }
  0x26   : > { %p1532_p3 = pnand %p1531_p2, %p1525_p11 }
  0x28   : > { %1535 = shalt.err (!%p1532_p3)
}
  0x29   : > { %s1639_s29 = smov 128   ;;  %s1640_s30 = smov 8  }
  0x2a   : > { %1405 = dma.hbm_to_vmem [thread:$0]  (!%p1752_p10), %s1748_s14, 2048, %s1756_s16, %s1758_s18, %s1639_s29, %s1639_s29, %s1640_s30  }
  0x2b   : > { %p1281_p12 = scmp.ge.s32.totalorder %s1636_s25, 1  ;;  %p171_p0 = scmp.lt.s32.totalorder %s1636_s25, 7 }
  0x2d   : > { %p172_p4 = pnand %p1281_p12, %p171_p0 }
  0x2e   : > { %s177_s9 = sand.u32 (!%p172_p4), 1, %s1612_s19  }
  0x2f   : > { %175 = sbr.rel (%p172_p4) target bundleno = 712 (0x2c8), region = 32  ;;  %s1282_s10 = sshll.u32 (!%p172_p4), %s177_s9, 7 }
  0x30   : > { %s178_s12 = scalar_lea.sflag (!%p172_p4), [#allocation8], %s177_s9  ;;  %s1789_s8 = scalar_lea.vmem (!%p172_p4), [#allocation7], %s1282_s10 }
  0x36   : > { %1595 = dma.done.wait (%p1733_p7), %s178_s12, 2048  }
  0x37   : > { %1597 = vsyncadd (%p1733_p7), %s178_s12, 4294965248  ;;  %p202_p10 = scmp.lt.s32.totalorder %s1624_s22, 2  ;;  %p206_p5 = scmp.eq.s32.totalorder %s1624_s22, 0 }
  0x38   : > { %p207_p6 = scmp.eq.s32.totalorder %s1620_s21, 0 }
  0x39   : > { %s1799_s14 = scalar_select %p202_p10, %s1624_s22, 2 }
  0x3a   : > { %p208_p8 = pnand %p207_p6, %p206_p5 }
  0x3b   : > { %s204_s18 = scalar_lea.vmem %s2140_s4, %s1799_s14  ;;  %v244_v0 = vld [vmem:[%s2136_s0] sm:$0xff] (!%p208_p8)  ;;  %v246_v1 = vld [vmem:[%s2136_s0 + $0x8] sm:$0xff] (!%p208_p8)  ;;  %v248_v2 = vld [vmem:[%s2136_s0 + $0x10] sm:$0xff] (!%p208_p8) }
  0x3c   : > { %211 = sbr.rel (%p208_p8) target bundleno = 82 (0x52), region = 40  ;;  %245 = vst [vmem:[#allocation2] sm:$0xff] (!%p208_p8), %v244_v0  ;;  %247 = vst [vmem:[#allocation2 + $0x8] sm:$0xff] (!%p208_p8), %v246_v1  ;;  %v250_v3 = vld [vmem:[%s2136_s0 + $0x18] sm:$0xff] (!%p208_p8)  ;;  %v252_v4 = vld [vmem:[%s2136_s0 + $0x20] sm:$0xff] (!%p208_p8) }
  0x3d   : > { %249 = vst [vmem:[#allocation2 + $0x10] sm:$0xff] (!%p208_p8), %v248_v2  ;;  %v254_v5 = vld [vmem:[%s2136_s0 + $0x28] sm:$0xff] (!%p208_p8)  ;;  %251 = vst [vmem:[#allocation2 + $0x18] sm:$0xff] (!%p208_p8), %v250_v3  ;;  %v256_v6 = vld [vmem:[%s2136_s0 + $0x30] sm:$0xff] (!%p208_p8) }
  0x3e   : > { %253 = vst [vmem:[#allocation2 + $0x20] sm:$0xff] (!%p208_p8), %v252_v4  ;;  %255 = vst [vmem:[#allocation2 + $0x28] sm:$0xff] (!%p208_p8), %v254_v5  ;;  %v258_v7 = vld [vmem:[%s2136_s0 + $0x38] sm:$0xff] (!%p208_p8)  ;;  %v260_v8 = vld [vmem:[%s2136_s0 + $0x40] sm:$0xff] (!%p208_p8) }
  0x3f   : > { %257 = vst [vmem:[#allocation2 + $0x30] sm:$0xff] (!%p208_p8), %v256_v6  ;;  %259 = vst [vmem:[#allocation2 + $0x38] sm:$0xff] (!%p208_p8), %v258_v7  ;;  %v262_v9 = vld [vmem:[%s2136_s0 + $0x48] sm:$0xff] (!%p208_p8)  ;;  %v264_v10 = vld [vmem:[%s2136_s0 + $0x50] sm:$0xff] (!%p208_p8) }
  0x40   : > { %261 = vst [vmem:[#allocation2 + $0x40] sm:$0xff] (!%p208_p8), %v260_v8  ;;  %v266_v11 = vld [vmem:[%s2136_s0 + $0x58] sm:$0xff] (!%p208_p8)  ;;  %263 = vst [vmem:[#allocation2 + $0x48] sm:$0xff] (!%p208_p8), %v262_v9  ;;  %v268_v12 = vld [vmem:[%s2136_s0 + $0x60] sm:$0xff] (!%p208_p8) }
  0x41   : > { %265 = vst [vmem:[#allocation2 + $0x50] sm:$0xff] (!%p208_p8), %v264_v10  ;;  %267 = vst [vmem:[#allocation2 + $0x58] sm:$0xff] (!%p208_p8), %v266_v11  ;;  %v270_v13 = vld [vmem:[%s2136_s0 + $0x68] sm:$0xff] (!%p208_p8)  ;;  %v272_v14 = vld [vmem:[%s2136_s0 + $0x70] sm:$0xff] (!%p208_p8) }
  0x42   : > { %269 = vst [vmem:[#allocation2 + $0x60] sm:$0xff] (!%p208_p8), %v268_v12  ;;  %271 = vst [vmem:[#allocation2 + $0x68] sm:$0xff] (!%p208_p8), %v270_v13  ;;  %v274_v15 = vld [vmem:[%s2136_s0 + $0x78] sm:$0xff] (!%p208_p8) }
  0x43   : > { %273 = vst [vmem:[#allocation2 + $0x70] sm:$0xff] %v272_v14  ;;  %275 = vst [vmem:[#allocation2 + $0x78] sm:$0xff] %v274_v15 }
  0x44   : > { %283 = vsyncadd [#allocation6], 2048  ;;  %v317_v16 = vld [vmem:[%s2137_s1] sm:$0xff]  ;;  %v319_v17 = vld [vmem:[%s2137_s1 + $0x8] sm:$0xff] }
  0x45   : > { %318 = vst [vmem:[#allocation3] sm:$0xff] %v317_v16  ;;  %320 = vst [vmem:[#allocation3 + $0x8] sm:$0xff] %v319_v17  ;;  %v321_v18 = vld [vmem:[%s2137_s1 + $0x10] sm:$0xff]  ;;  %v323_v19 = vld [vmem:[%s2137_s1 + $0x18] sm:$0xff] }
  0x46   : > { %v325_v20 = vld [vmem:[%s2137_s1 + $0x20] sm:$0xff]  ;;  %322 = vst [vmem:[#allocation3 + $0x10] sm:$0xff] %v321_v18  ;;  %324 = vst [vmem:[#allocation3 + $0x18] sm:$0xff] %v323_v19  ;;  %v327_v21 = vld [vmem:[%s2137_s1 + $0x28] sm:$0xff] }
  0x47   : > { %326 = vst [vmem:[#allocation3 + $0x20] sm:$0xff] %v325_v20  ;;  %v329_v22 = vld [vmem:[%s2137_s1 + $0x30] sm:$0xff]  ;;  %v331_v23 = vld [vmem:[%s2137_s1 + $0x38] sm:$0xff]  ;;  %328 = vst [vmem:[#allocation3 + $0x28] sm:$0xff] %v327_v21 }
  0x48   : > { %330 = vst [vmem:[#allocation3 + $0x30] sm:$0xff] %v329_v22  ;;  %332 = vst [vmem:[#allocation3 + $0x38] sm:$0xff] %v331_v23  ;;  %v333_v24 = vld [vmem:[%s2137_s1 + $0x40] sm:$0xff]  ;;  %v335_v25 = vld [vmem:[%s2137_s1 + $0x48] sm:$0xff] }
  0x49   : > { %v337_v26 = vld [vmem:[%s2137_s1 + $0x50] sm:$0xff]  ;;  %334 = vst [vmem:[#allocation3 + $0x40] sm:$0xff] %v333_v24  ;;  %336 = vst [vmem:[#allocation3 + $0x48] sm:$0xff] %v335_v25  ;;  %v339_v27 = vld [vmem:[%s2137_s1 + $0x58] sm:$0xff] }
  0x4a   : > { %338 = vst [vmem:[#allocation3 + $0x50] sm:$0xff] %v337_v26  ;;  %v341_v28 = vld [vmem:[%s2137_s1 + $0x60] sm:$0xff]  ;;  %v343_v29 = vld [vmem:[%s2137_s1 + $0x68] sm:$0xff]  ;;  %340 = vst [vmem:[#allocation3 + $0x58] sm:$0xff] %v339_v27 }
  0x4b   : > { %342 = vst [vmem:[#allocation3 + $0x60] sm:$0xff] %v341_v28  ;;  %344 = vst [vmem:[#allocation3 + $0x68] sm:$0xff] %v343_v29  ;;  %v345_v30 = vld [vmem:[%s2137_s1 + $0x70] sm:$0xff]  ;;  %v347_v31 = vld [vmem:[%s2137_s1 + $0x78] sm:$0xff] }
  0x4c   : > { %346 = vst [vmem:[#allocation3 + $0x70] sm:$0xff] %v345_v30  ;;  %348 = vst [vmem:[#allocation3 + $0x78] sm:$0xff] %v347_v31 }
  0x4d   : > { %356 = vsyncadd [#allocation6 + $0x1], 2048 }
  0x4e   : > { %1598 = dma.done.wait [#allocation6 + $0x1], 2048 }
  0x4f   : > { %1599 = vsyncadd [#allocation6 + $0x1], 4294965248 }
  0x50   : > { %1600 = dma.done.wait [#allocation6], 2048 }
  0x51   : > { %1601 = vsyncadd [#allocation6], 4294965248 }
  0x52 PF: > { %p1283_p7 = scmp.ne.s32.totalorder %s1620_s21, 0 }
  0x53   : > { %v1480_v32 = vld [vmem:[%s1789_s8 + $0x4] ss:$8 sps:$4 sm:$0xff] (!%p1283_p7)   ;;  %v1482_v33 = vld [vmem:[%s1789_s8] ss:$8 sps:$4 sm:$0xff] (!%p1283_p7)   ;;  %v1641_v34 = vmov (!%p1283_p7), 0   ;;  %v386_v53 = vld [vmem:[#allocation3 + $0x10] sm:$0xff] (!%p1283_p7) }
  0x54   : > { %367 = sbr.rel (%p1283_p7) target bundleno = 391 (0x187), region = 112  ;;  %504 = vmatprep.mubr.bf16.mxu0 (!%p1283_p7), %v1641_v34  ;;  %658 = vmatprep.mubr.bf16.mxu1 (!%p1283_p7), %v1641_v34  ;;  %v1483_v35 = vld [vmem:[%s1789_s8 + $0x14] ss:$8 sps:$4 sm:$0xff] (!%p1283_p7)   ;;  %v1485_v36 = vld [vmem:[%s1789_s8 + $0x10] ss:$8 sps:$4 sm:$0xff] (!%p1283_p7)   ;;  %v384_v49 = vld [vmem:[#allocation3] sm:$0xff] (!%p1283_p7) }
  0x55   : > { %472 = vmatprep.subr.bf16.mxu0 (!%p1283_p7), %v1480_v32  ;;  %626 = vmatprep.subr.bf16.mxu1 (!%p1283_p7), %v1480_v32  ;;  %v1486_v37 = vld [vmem:[%s1789_s8 + $0x24] ss:$8 sps:$4 sm:$0xff] (!%p1283_p7)   ;;  %v1488_v38 = vld [vmem:[%s1789_s8 + $0x20] ss:$8 sps:$4 sm:$0xff] (!%p1283_p7)   ;;  %v1489_v39 = vld [vmem:[%s1789_s8 + $0x34] ss:$8 sps:$4 sm:$0xff] (!%p1283_p7)  }
  0x56   : > { %473 = vmatpush1.bf16.msra.mxu0 (!%p1283_p7), %v1482_v33  ;;  %627 = vmatpush1.bf16.msra.mxu1 (!%p1283_p7), %v1482_v33  ;;  %v1491_v40 = vld [vmem:[%s1789_s8 + $0x30] ss:$8 sps:$4 sm:$0xff] (!%p1283_p7)   ;;  %v1492_v41 = vld [vmem:[%s1789_s8 + $0x44] ss:$8 sps:$4 sm:$0xff] (!%p1283_p7)   ;;  %v1494_v42 = vld [vmem:[%s1789_s8 + $0x40] ss:$8 sps:$4 sm:$0xff] (!%p1283_p7)  }
  0x57   : > { %474 = vmatprep.subr.bf16.mxu0 (!%p1283_p7), %v1483_v35  ;;  %628 = vmatprep.subr.bf16.mxu1 (!%p1283_p7), %v1483_v35  ;;  %v1495_v43 = vld [vmem:[%s1789_s8 + $0x54] ss:$8 sps:$4 sm:$0xff] (!%p1283_p7)   ;;  %v1497_v44 = vld [vmem:[%s1789_s8 + $0x50] ss:$8 sps:$4 sm:$0xff] (!%p1283_p7)   ;;  %v1498_v45 = vld [vmem:[%s1789_s8 + $0x64] ss:$8 sps:$4 sm:$0xff] (!%p1283_p7)  }
  0x58   : > { %v1500_v46 = vld [vmem:[%s1789_s8 + $0x60] ss:$8 sps:$4 sm:$0xff] (!%p1283_p7)   ;;  %v1501_v47 = vld [vmem:[%s1789_s8 + $0x74] ss:$8 sps:$4 sm:$0xff] (!%p1283_p7)   ;;  %v1503_v48 = vld [vmem:[%s1789_s8 + $0x70] ss:$8 sps:$4 sm:$0xff] (!%p1283_p7)  }
  0x59   : > { %v618_v50 = vld [vmem:[#allocation3 + $0x40] sm:$0xff] (!%p1283_p7)  ;;  %v385_v51 = vld [vmem:[#allocation3 + $0x8] sm:$0xff] (!%p1283_p7)  ;;  %v620_v54 = vld [vmem:[#allocation3 + $0x50] sm:$0xff] (!%p1283_p7) }
  0x5a   : > { %475 = vmatpush1.bf16.msra.mxu0 (!%p1283_p7), %v1485_v36  ;;  %629 = vmatpush1.bf16.msra.mxu1 (!%p1283_p7), %v1485_v36  ;;  %v619_v52 = vld [vmem:[#allocation3 + $0x48] sm:$0xff] (!%p1283_p7)  ;;  %v387_v55 = vld [vmem:[#allocation3 + $0x18] sm:$0xff] (!%p1283_p7)  ;;  %v388_v57 = vld [vmem:[#allocation3 + $0x20] sm:$0xff] (!%p1283_p7) }
  0x5b   : > { %476 = vmatprep.subr.bf16.mxu0 %v1486_v37  ;;  %630 = vmatprep.subr.bf16.mxu1 %v1486_v37  ;;  %v621_v56 = vld [vmem:[#allocation3 + $0x58] sm:$0xff]  ;;  %v622_v58 = vld [vmem:[#allocation3 + $0x60] sm:$0xff]  ;;  %v389_v59 = vld [vmem:[#allocation3 + $0x28] sm:$0xff] }
  0x5c   : > { %v623_v60 = vld [vmem:[#allocation3 + $0x68] sm:$0xff]  ;;  %v390_v61 = vld [vmem:[#allocation3 + $0x30] sm:$0xff]  ;;  %v391_v63 = vld [vmem:[#allocation3 + $0x38] sm:$0xff] }
  0x5d   : > { %v624_v62 = vld [vmem:[#allocation3 + $0x70] sm:$0xff]  ;;  %v625_v0 = vld [vmem:[#allocation3 + $0x78] sm:$0xff] }
  0x5e   : > { %477 = vmatpush1.bf16.msra.mxu0 %v1488_v38  ;;  %631 = vmatpush1.bf16.msra.mxu1 %v1488_v38 }
  0x5f   : > { %478 = vmatprep.subr.bf16.mxu0 %v1489_v39  ;;  %632 = vmatprep.subr.bf16.mxu1 %v1489_v39 }
  0x62   : > { %479 = vmatpush1.bf16.msra.mxu0 %v1491_v40  ;;  %633 = vmatpush1.bf16.msra.mxu1 %v1491_v40 }
  0x63   : > { %480 = vmatprep.subr.bf16.mxu0 %v1492_v41  ;;  %634 = vmatprep.subr.bf16.mxu1 %v1492_v41 }
  0x66   : > { %481 = vmatpush1.bf16.msra.mxu0 %v1494_v42  ;;  %635 = vmatpush1.bf16.msra.mxu1 %v1494_v42 }
  0x67   : > { %482 = vmatprep.subr.bf16.mxu0 %v1495_v43  ;;  %636 = vmatprep.subr.bf16.mxu1 %v1495_v43 }
  0x6a   : > { %483 = vmatpush1.bf16.msra.mxu0 %v1497_v44  ;;  %637 = vmatpush1.bf16.msra.mxu1 %v1497_v44 }
  0x6b   : > { %484 = vmatprep.subr.bf16.mxu0 %v1498_v45  ;;  %638 = vmatprep.subr.bf16.mxu1 %v1498_v45 }
  0x6e   : > { %485 = vmatpush1.bf16.msra.mxu0 %v1500_v46  ;;  %639 = vmatpush1.bf16.msra.mxu1 %v1500_v46 }
  0x6f   : > { %486 = vmatprep.subr.bf16.mxu0 %v1501_v47  ;;  %640 = vmatprep.subr.bf16.mxu1 %v1501_v47 }
  0x72   : > { %487 = vmatpush1.bf16.msra.mxu0 %v1503_v48  ;;  %641 = vmatpush1.bf16.msra.mxu1 %v1503_v48 }
  0x75   : > { %505 = vmatmul.mubr.bf16.vlgmr.msra.gmra.mrb[0].mxu0 %v384_v49  ;;  %659 = vmatmul.mubr.bf16.vlgmr.msra.gmra.mrb[0].mxu1 %v618_v50 }
  0x76   : > { %514 = vmatprep.mubr.bf16.mxu0 %v1641_v34  ;;  %668 = vmatprep.mubr.bf16.mxu1 %v1641_v34 }
  0x7d   : > { %515 = vmatmul.mubr.bf16.gmra.mrb[4].mxu0 %v385_v51  ;;  %669 = vmatmul.mubr.bf16.gmra.mrb[4].mxu1 %v619_v52 }
  0x7e   : > { %524 = vmatprep.mubr.bf16.mxu0 %v1641_v34  ;;  %678 = vmatprep.mubr.bf16.mxu1 %v1641_v34 }
  0x85   : > { %525 = vmatmul.mubr.bf16.gmra.mrb[8].mxu0 %v386_v53  ;;  %679 = vmatmul.mubr.bf16.gmra.mrb[8].mxu1 %v620_v54 }
  0x86   : > { %534 = vmatprep.mubr.bf16.mxu0 %v1641_v34  ;;  %688 = vmatprep.mubr.bf16.mxu1 %v1641_v34 }
  0x8d   : > { %535 = vmatmul.mubr.bf16.gmra.mrb[12].mxu0 %v387_v55  ;;  %689 = vmatmul.mubr.bf16.gmra.mrb[12].mxu1 %v621_v56 }
  0x8e   : > { %544 = vmatprep.mubr.bf16.mxu0 %v1641_v34  ;;  %698 = vmatprep.mubr.bf16.mxu1 %v1641_v34 }
  0x95   : > { %545 = vmatmul.mubr.bf16.gmra.mrb[16].mxu0 %v388_v57  ;;  %699 = vmatmul.mubr.bf16.gmra.mrb[16].mxu1 %v622_v58 }
  0x96   : > { %554 = vmatprep.mubr.bf16.mxu0 %v1641_v34  ;;  %708 = vmatprep.mubr.bf16.mxu1 %v1641_v34 }
  0x9d   : > { %555 = vmatmul.mubr.bf16.gmra.mrb[20].mxu0 %v389_v59  ;;  %709 = vmatmul.mubr.bf16.gmra.mrb[20].mxu1 %v623_v60 }
  0x9e   : > { %564 = vmatprep.mubr.bf16.mxu0 %v1641_v34  ;;  %718 = vmatprep.mubr.bf16.mxu1 %v1641_v34 }
  0xa5   : > { %565 = vmatmul.mubr.bf16.gmra.mrb[24].mxu0 %v390_v61  ;;  %719 = vmatmul.mubr.bf16.gmra.mrb[24].mxu1 %v624_v62 }
  0xa6   : > { %574 = vmatprep.mubr.bf16.mxu0 %v1641_v34  ;;  %728 = vmatprep.mubr.bf16.mxu1 %v1641_v34 }
  0xad   : > { %575 = vmatmul.mubr.bf16.gmra.mrb[28].mxu0 %v391_v63  ;;  %729 = vmatmul.mubr.bf16.gmra.mrb[28].mxu1 %v625_v0 }
 0x148   : > { %v506_v1 = vpop.f32.mrb[0].mxu0  ;;  %v660_v2 = vpop.f32.mrb[0].mxu1 }
 0x149   : > { %v508_v3 = vpop.f32.mrb[1].mxu0  ;;  %v662_v4 = vpop.f32.mrb[1].mxu1 }
 0x14a   : > { %v510_v5 = vpop.f32.mrb[2].mxu0  ;;  %v664_v6 = vpop.f32.mrb[2].mxu1 }
 0x14b   : > { %v585_v7 = vpack.c.bf16 %v510_v5, %v506_v1  ;;  %v739_v8 = vpack.c.bf16 %v664_v6, %v660_v2  ;;  %v512_v9 = vpop.f32.mrb[3].mxu0  ;;  %v666_v10 = vpop.f32.mrb[3].mxu1 }
 0x14c   : > { %v601_v11 = vpack.c.bf16 %v512_v9, %v508_v3  ;;  %v756_v12 = vpack.c.bf16 %v666_v10, %v662_v4 }
 0x14d   : > { %593 = vst [vmem:[#allocation4] sm:$0xff] %v585_v7  ;;  %748 = vst [vmem:[#allocation4 + $0x40] sm:$0xff] %v739_v8 }
 0x14e   : > { %609 = vst [vmem:[#allocation5] sm:$0xff] %v601_v11  ;;  %765 = vst [vmem:[#allocation5 + $0x40] sm:$0xff] %v756_v12 }
 0x150   : > { %v516_v13 = vpop.f32.mrb[4].mxu0  ;;  %v670_v14 = vpop.f32.mrb[4].mxu1 }
 0x151   : > { %v518_v15 = vpop.f32.mrb[5].mxu0  ;;  %v672_v16 = vpop.f32.mrb[5].mxu1 }
 0x152   : > { %v520_v17 = vpop.f32.mrb[6].mxu0  ;;  %v674_v18 = vpop.f32.mrb[6].mxu1 }
 0x153   : > { %v586_v19 = vpack.c.bf16 %v520_v17, %v516_v13  ;;  %v740_v20 = vpack.c.bf16 %v674_v18, %v670_v14  ;;  %v522_v21 = vpop.f32.mrb[7].mxu0  ;;  %v676_v22 = vpop.f32.mrb[7].mxu1 }
 0x154   : > { %v602_v23 = vpack.c.bf16 %v522_v21, %v518_v15  ;;  %v757_v24 = vpack.c.bf16 %v676_v22, %v672_v16 }
 0x155   : > { %594 = vst [vmem:[#allocation4 + $0x8] sm:$0xff] %v586_v19  ;;  %749 = vst [vmem:[#allocation4 + $0x48] sm:$0xff] %v740_v20 }
 0x156   : > { %610 = vst [vmem:[#allocation5 + $0x8] sm:$0xff] %v602_v23  ;;  %766 = vst [vmem:[#allocation5 + $0x48] sm:$0xff] %v757_v24 }
 0x158   : > { %v526_v25 = vpop.f32.mrb[8].mxu0  ;;  %v680_v26 = vpop.f32.mrb[8].mxu1 }
 0x159   : > { %v528_v27 = vpop.f32.mrb[9].mxu0  ;;  %v682_v28 = vpop.f32.mrb[9].mxu1 }
 0x15a   : > { %v530_v29 = vpop.f32.mrb[10].mxu0  ;;  %v684_v30 = vpop.f32.mrb[10].mxu1 }
 0x15b   : > { %v587_v31 = vpack.c.bf16 %v530_v29, %v526_v25  ;;  %v741_v32 = vpack.c.bf16 %v684_v30, %v680_v26  ;;  %v532_v33 = vpop.f32.mrb[11].mxu0  ;;  %v686_v34 = vpop.f32.mrb[11].mxu1 }
 0x15c   : > { %v603_v35 = vpack.c.bf16 %v532_v33, %v528_v27  ;;  %v758_v36 = vpack.c.bf16 %v686_v34, %v682_v28 }
 0x15d   : > { %595 = vst [vmem:[#allocation4 + $0x10] sm:$0xff] %v587_v31  ;;  %750 = vst [vmem:[#allocation4 + $0x50] sm:$0xff] %v741_v32 }
 0x15e   : > { %611 = vst [vmem:[#allocation5 + $0x10] sm:$0xff] %v603_v35  ;;  %767 = vst [vmem:[#allocation5 + $0x50] sm:$0xff] %v758_v36 }
 0x160   : > { %v536_v37 = vpop.f32.mrb[12].mxu0  ;;  %v690_v38 = vpop.f32.mrb[12].mxu1 }
 0x161   : > { %v538_v39 = vpop.f32.mrb[13].mxu0  ;;  %v692_v40 = vpop.f32.mrb[13].mxu1 }
 0x162   : > { %v540_v41 = vpop.f32.mrb[14].mxu0  ;;  %v694_v42 = vpop.f32.mrb[14].mxu1 }
 0x163   : > { %v588_v43 = vpack.c.bf16 %v540_v41, %v536_v37  ;;  %v742_v44 = vpack.c.bf16 %v694_v42, %v690_v38  ;;  %v542_v45 = vpop.f32.mrb[15].mxu0  ;;  %v696_v46 = vpop.f32.mrb[15].mxu1 }
 0x164   : > { %v604_v47 = vpack.c.bf16 %v542_v45, %v538_v39  ;;  %v759_v48 = vpack.c.bf16 %v696_v46, %v692_v40 }
 0x165   : > { %596 = vst [vmem:[#allocation4 + $0x18] sm:$0xff] %v588_v43  ;;  %751 = vst [vmem:[#allocation4 + $0x58] sm:$0xff] %v742_v44 }
 0x166   : > { %612 = vst [vmem:[#allocation5 + $0x18] sm:$0xff] %v604_v47  ;;  %768 = vst [vmem:[#allocation5 + $0x58] sm:$0xff] %v759_v48 }
 0x168   : > { %v546_v49 = vpop.f32.mrb[16].mxu0  ;;  %v700_v50 = vpop.f32.mrb[16].mxu1 }
 0x169   : > { %v548_v51 = vpop.f32.mrb[17].mxu0  ;;  %v702_v52 = vpop.f32.mrb[17].mxu1 }
 0x16a   : > { %v550_v53 = vpop.f32.mrb[18].mxu0  ;;  %v704_v54 = vpop.f32.mrb[18].mxu1 }
 0x16b   : > { %v589_v55 = vpack.c.bf16 %v550_v53, %v546_v49  ;;  %v743_v56 = vpack.c.bf16 %v704_v54, %v700_v50  ;;  %v552_v57 = vpop.f32.mrb[19].mxu0  ;;  %v706_v58 = vpop.f32.mrb[19].mxu1 }
 0x16c   : > { %v605_v59 = vpack.c.bf16 %v552_v57, %v548_v51  ;;  %v760_v60 = vpack.c.bf16 %v706_v58, %v702_v52 }
 0x16d   : > { %597 = vst [vmem:[#allocation4 + $0x20] sm:$0xff] %v589_v55  ;;  %752 = vst [vmem:[#allocation4 + $0x60] sm:$0xff] %v743_v56 }
 0x16e   : > { %613 = vst [vmem:[#allocation5 + $0x20] sm:$0xff] %v605_v59  ;;  %769 = vst [vmem:[#allocation5 + $0x60] sm:$0xff] %v760_v60 }
 0x170   : > { %v556_v61 = vpop.f32.mrb[20].mxu0  ;;  %v710_v62 = vpop.f32.mrb[20].mxu1 }
 0x171   : > { %v558_v63 = vpop.f32.mrb[21].mxu0  ;;  %v712_v0 = vpop.f32.mrb[21].mxu1 }
 0x172   : > { %v560_v1 = vpop.f32.mrb[22].mxu0  ;;  %v714_v2 = vpop.f32.mrb[22].mxu1 }
 0x173   : > { %v590_v3 = vpack.c.bf16 %v560_v1, %v556_v61  ;;  %v744_v4 = vpack.c.bf16 %v714_v2, %v710_v62  ;;  %v562_v5 = vpop.f32.mrb[23].mxu0  ;;  %v716_v6 = vpop.f32.mrb[23].mxu1 }
 0x174   : > { %v606_v7 = vpack.c.bf16 %v562_v5, %v558_v63  ;;  %v761_v8 = vpack.c.bf16 %v716_v6, %v712_v0 }
 0x175   : > { %598 = vst [vmem:[#allocation4 + $0x28] sm:$0xff] %v590_v3  ;;  %753 = vst [vmem:[#allocation4 + $0x68] sm:$0xff] %v744_v4 }
 0x176   : > { %614 = vst [vmem:[#allocation5 + $0x28] sm:$0xff] %v606_v7  ;;  %770 = vst [vmem:[#allocation5 + $0x68] sm:$0xff] %v761_v8 }
 0x178   : > { %v566_v9 = vpop.f32.mrb[24].mxu0  ;;  %v720_v10 = vpop.f32.mrb[24].mxu1 }
 0x179   : > { %v568_v11 = vpop.f32.mrb[25].mxu0  ;;  %v722_v12 = vpop.f32.mrb[25].mxu1 }
 0x17a   : > { %v570_v13 = vpop.f32.mrb[26].mxu0  ;;  %v724_v14 = vpop.f32.mrb[26].mxu1 }
 0x17b   : > { %v591_v15 = vpack.c.bf16 %v570_v13, %v566_v9  ;;  %v745_v16 = vpack.c.bf16 %v724_v14, %v720_v10  ;;  %v572_v17 = vpop.f32.mrb[27].mxu0  ;;  %v726_v18 = vpop.f32.mrb[27].mxu1 }
 0x17c   : > { %v607_v19 = vpack.c.bf16 %v572_v17, %v568_v11  ;;  %v762_v20 = vpack.c.bf16 %v726_v18, %v722_v12 }
 0x17d   : > { %599 = vst [vmem:[#allocation4 + $0x30] sm:$0xff] %v591_v15  ;;  %754 = vst [vmem:[#allocation4 + $0x70] sm:$0xff] %v745_v16 }
 0x17e   : > { %615 = vst [vmem:[#allocation5 + $0x30] sm:$0xff] %v607_v19  ;;  %771 = vst [vmem:[#allocation5 + $0x70] sm:$0xff] %v762_v20 }
 0x180   : > { %v576_v21 = vpop.f32.mrb[28].mxu0  ;;  %v730_v22 = vpop.f32.mrb[28].mxu1 }
 0x181   : > { %v578_v23 = vpop.f32.mrb[29].mxu0  ;;  %v732_v24 = vpop.f32.mrb[29].mxu1 }
 0x182   : > { %v580_v25 = vpop.f32.mrb[30].mxu0  ;;  %v734_v26 = vpop.f32.mrb[30].mxu1 }
 0x183   : > { %v592_v27 = vpack.c.bf16 %v580_v25, %v576_v21  ;;  %v746_v28 = vpack.c.bf16 %v734_v26, %v730_v22  ;;  %v582_v29 = vpop.f32.mrb[31].mxu0  ;;  %v736_v30 = vpop.f32.mrb[31].mxu1 }
 0x184   : > { %v608_v31 = vpack.c.bf16 %v582_v29, %v578_v23  ;;  %v763_v32 = vpack.c.bf16 %v736_v30, %v732_v24 }
 0x185   : > { %600 = vst [vmem:[#allocation4 + $0x38] sm:$0xff] %v592_v27  ;;  %755 = vst [vmem:[#allocation4 + $0x78] sm:$0xff] %v746_v28 }
 0x186   : > { %616 = vst [vmem:[#allocation5 + $0x38] sm:$0xff] %v608_v31  ;;  %772 = vst [vmem:[#allocation5 + $0x78] sm:$0xff] %v763_v32 }
 0x187 PF: > { %v811_v33 = vld [vmem:[#allocation4 + $0x40] sm:$0xff]  ;;  %v812_v35 = vld [vmem:[#allocation4 + $0x48] sm:$0xff]  ;;  %s1935_s8 = sshll.u32 %s1620_s21, 7  ;;  %v813_v37 = vld [vmem:[#allocation4 + $0x50] sm:$0xff]  ;;  %v1642_v38 = vmov 0   ;;  %s1096_s7 = sadd.s32 1, %s1624_s22 }
 0x188   : > { %v803_v34 = vld [vmem:[#allocation4] sm:$0xff]  ;;  %1316 = vmatprep.subr.bf16.mxu0 %v811_v33  ;;  %1380 = vmatprep.subr.bf16.mxu1 %v811_v33  ;;  %s774_s16 = sshra.s32 %s1935_s8, 5  ;;  %v804_v36 = vld [vmem:[#allocation4 + $0x8] sm:$0xff]  ;;  %s1947_s6 = scalar_lea.vmem %s2138_s2, %s1935_s8  ;;  %v805_v43 = vld [vmem:[#allocation4 + $0x10] sm:$0xff] }
 0x189   : > { %1317 = vmatpush3.bf16.msra.mxu0 %v803_v34  ;;  %1388 = vmatpush3.bf16.msra.mxu1 %v803_v34  ;;  %s1315_s17 = sshll.u32 %s774_s16, 4  ;;  %v814_v44 = vld [vmem:[#allocation4 + $0x58] sm:$0xff]  ;;  %v919_v45 = vld [vmem:[%s1947_s6 + $0x10] sm:$0xff]  ;;  %v917_v46 = vld [vmem:[%s1947_s6] sm:$0xff]  ;;  %s1029_s29 = sshra.s32 %s1935_s8, 4 }
 0x18a   : > { %1318 = vmatprep.subr.bf16.mxu0 %v812_v35  ;;  %1381 = vmatprep.subr.bf16.mxu1 %v812_v35  ;;  %s1938_s13 = scalar_lea.vmem [#allocation2], %s1315_s17  ;;  %v920_v47 = vld [vmem:[%s1947_s6 + $0x18] sm:$0xff]  ;;  %v918_v48 = vld [vmem:[%s1947_s6 + $0x8] sm:$0xff]  ;;  %v815_v50 = vld [vmem:[#allocation4 + $0x60] sm:$0xff]  ;;  %s1984_s30 = sshll.u32 %s1029_s29, 3 }
 0x18b   : > { %1505 = vset.pattern.permute.xlu1 %v1642_v38  ;;  %1504 = vset.pattern.permute.xlu0 %v1642_v38  ;;  %v1941_v39 = vld [vmem:[%s1938_s13 + $0x8] sm:$0xff]  ;;  %v806_v49 = vld [vmem:[#allocation4 + $0x18] sm:$0xff]  ;;  %v921_v52 = vld [vmem:[%s1947_s6 + $0x20] sm:$0xff]  ;;  %s1993_s9 = scalar_lea.vmem [#allocation5], %s1984_s30  ;;  %p1305_p9 = scmp.ge.s32.totalorder %s1096_s7, 3 }
 0x18c   : > { %v1950_v40 = vld [vmem:[%s1938_s13 + $0x28] sm:$0xff]  ;;  %v788_v41 = vunpack.c.l.s8.bf16 %v1941_v39  ;;  %945 = vperm.xlu1 %1505, %v919_v45   ;;  %935 = vperm.xlu0 %1504, %v917_v46   ;;  %v807_v53 = vld [vmem:[#allocation4 + $0x20] sm:$0xff]  ;;  %v924_v55 = vld [vmem:[%s1947_s6 + $0x38] sm:$0xff]  ;;  %v790_v6 = vunpack.c.h.s8.bf16 %v1941_v39  ;;  %s1126_s14 = scalar_lea.vmem (!%p1305_p9), [#allocation3], %s1984_s30 }
 0x18d   : > { %1319 = vmatpush3.bf16.msra.mxu0 %v804_v36  ;;  %1389 = vmatpush3.bf16.msra.mxu1 %v804_v36  ;;  %v796_v42 = vunpack.c.l.s8.bf16 %v1950_v40  ;;  %v922_v51 = vld [vmem:[%s1947_s6 + $0x28] sm:$0xff]  ;;  %v923_v56 = vld [vmem:[%s1947_s6 + $0x30] sm:$0xff]  ;;  %v925_v60 = vld [vmem:[%s1947_s6 + $0x40] sm:$0xff]  ;;  %v798_v7 = vunpack.c.h.s8.bf16 %v1950_v40 }
 0x18e   : > { %1320 = vmatprep.subr.bf16.mxu0 %v813_v37  ;;  %1382 = vmatprep.subr.bf16.mxu1 %v813_v37  ;;  %v816_v54 = vld [vmem:[#allocation4 + $0x68] sm:$0xff]  ;;  %v817_v58 = vld [vmem:[#allocation4 + $0x70] sm:$0xff]  ;;  %v818_v62 = vld [vmem:[#allocation4 + $0x78] sm:$0xff] }
 0x18f   : > { %851 = vmatprep.mubr.bf16.mxu0 %v788_v41  ;;  %883 = vmatprep.mubr.bf16.mxu1 %v796_v42  ;;  %v808_v57 = vld [vmem:[#allocation4 + $0x28] sm:$0xff]  ;;  %v809_v61 = vld [vmem:[#allocation4 + $0x30] sm:$0xff]  ;;  %v779_v63 = vld [vmem:[%s1938_s13] sm:$0xff] }
 0x190   : > { %950 = vperm.xlu1 %1505, %v920_v47   ;;  %940 = vperm.xlu0 %1504, %v918_v48   ;;  %v926_v59 = vld [vmem:[%s1947_s6 + $0x48] sm:$0xff]  ;;  %v783_v0 = vld [vmem:[%s1938_s13 + $0x20] sm:$0xff]  ;;  %v928_v1 = vld [vmem:[%s1947_s6 + $0x58] sm:$0xff]  ;;  %v787_v4 = vunpack.c.l.s8.bf16 %v779_v63  ;;  %v789_v14 = vunpack.c.h.s8.bf16 %v779_v63 }
 0x191   : > { %1321 = vmatpush3.bf16.msra.mxu0 %v805_v43  ;;  %1390 = vmatpush3.bf16.msra.mxu1 %v805_v43  ;;  %v927_v2 = vld [vmem:[%s1947_s6 + $0x50] sm:$0xff]  ;;  %v810_v3 = vld [vmem:[#allocation4 + $0x38] sm:$0xff]  ;;  %v795_v5 = vunpack.c.l.s8.bf16 %v783_v0  ;;  %v930_v8 = vld [vmem:[%s1947_s6 + $0x68] sm:$0xff]  ;;  %v797_v15 = vunpack.c.h.s8.bf16 %v783_v0 }
 0x192   : > { %1322 = vmatprep.subr.bf16.mxu0 %v814_v44  ;;  %1383 = vmatprep.subr.bf16.mxu1 %v814_v44  ;;  %v929_v9 = vld [vmem:[%s1947_s6 + $0x60] sm:$0xff]  ;;  %v782_v10 = vld [vmem:[%s1938_s13 + $0x18] sm:$0xff]  ;;  %v931_v13 = vld [vmem:[%s1947_s6 + $0x70] sm:$0xff] }
 0x193   : > { %v786_v11 = vld [vmem:[%s1938_s13 + $0x38] sm:$0xff]  ;;  %v792_v16 = vunpack.c.l.s8.bf16 %v782_v10  ;;  %v781_v18 = vld [vmem:[%s1938_s13 + $0x10] sm:$0xff]  ;;  %v794_v22 = vunpack.c.h.s8.bf16 %v782_v10  ;;  %v1033_v35 = vld [vmem:[%s1993_s9] sm:$0xff] }
 0x194   : > { %960 = vperm.xlu1 %1505, %v922_v51   ;;  %955 = vperm.xlu0 %1504, %v921_v52   ;;  %v932_v12 = vld [vmem:[%s1947_s6 + $0x78] sm:$0xff]  ;;  %v800_v17 = vunpack.c.l.s8.bf16 %v786_v11  ;;  %v785_v19 = vld [vmem:[%s1938_s13 + $0x30] sm:$0xff]  ;;  %v791_v20 = vunpack.c.l.s8.bf16 %v781_v18  ;;  %v802_v23 = vunpack.c.h.s8.bf16 %v786_v11  ;;  %v793_v24 = vunpack.c.h.s8.bf16 %v781_v18  ;;  %v1037_v36 = vld [vmem:[%s1993_s9 + $0x20] sm:$0xff] }
 0x195   : > { %1323 = vmatpush3.bf16.msra.mxu0 %v806_v49  ;;  %1391 = vmatpush3.bf16.msra.mxu1 %v806_v49  ;;  %v799_v21 = vunpack.c.l.s8.bf16 %v785_v19  ;;  %v801_v25 = vunpack.c.h.s8.bf16 %v785_v19  ;;  %v1041_v42 = vunpack.c.l.bf16 %v1033_v35  ;;  %v1049_v44 = vunpack.c.l.bf16 %v1037_v36 }
 0x196   : > { %1324 = vmatprep.subr.bf16.mxu0 %v815_v50  ;;  %1384 = vmatprep.subr.bf16.mxu1 %v815_v50  ;;  %v1042_v48 = vunpack.c.h.bf16 %v1033_v35  ;;  %v1050_v50 = vunpack.c.h.bf16 %v1037_v36  ;;  %v1035_v35 = vld [vmem:[%s1993_s9 + $0x10] sm:$0xff] }
 0x197   : > { %v1039_v36 = vld [vmem:[%s1993_s9 + $0x30] sm:$0xff] }
 0x198   : > { %970 = vperm.xlu1 %1505, %v924_v55   ;;  %965 = vperm.xlu0 %1504, %v923_v56   ;;  %v2002_v56 = vld [vmem:[%s204_s18] ss:$0 sm:$0xff] }
 0x199   : > { %1325 = vmatpush3.bf16.msra.mxu0 %v807_v53  ;;  %1392 = vmatpush3.bf16.msra.mxu1 %v807_v53 }
 0x19a   : > { %1326 = vmatprep.subr.bf16.mxu0 %v816_v54  ;;  %1385 = vmatprep.subr.bf16.mxu1 %v816_v54 }
 0x19c   : > { %980 = vperm.xlu1 %1505, %v926_v59   ;;  %975 = vperm.xlu0 %1504, %v925_v60  }
 0x19d   : > { %1327 = vmatpush3.bf16.msra.mxu0 %v808_v57  ;;  %1393 = vmatpush3.bf16.msra.mxu1 %v808_v57 }
 0x19e   : > { %1328 = vmatprep.subr.bf16.mxu0 %v817_v58  ;;  %1386 = vmatprep.subr.bf16.mxu1 %v817_v58 }
 0x1a0   : > { %990 = vperm.xlu1 %1505, %v928_v1   ;;  %985 = vperm.xlu0 %1504, %v927_v2  }
 0x1a1   : > { %1329 = vmatpush3.bf16.msra.mxu0 %v809_v61  ;;  %1394 = vmatpush3.bf16.msra.mxu1 %v809_v61  ;;  %v1034_v61 = vld [vmem:[%s1993_s9 + $0x8] sm:$0xff] }
 0x1a2   : > { %1330 = vmatprep.subr.bf16.mxu0 %v818_v62  ;;  %1387 = vmatprep.subr.bf16.mxu1 %v818_v62  ;;  %v1038_v62 = vld [vmem:[%s1993_s9 + $0x28] sm:$0xff] }
 0x1a3   : > { %v1052_v19 = vunpack.c.h.bf16 %v1038_v62 }
 0x1a4   : > { %1000 = vperm.xlu1 %1505, %v930_v8   ;;  %995 = vperm.xlu0 %1504, %v929_v9   ;;  %v1051_v9 = vunpack.c.l.bf16 %v1038_v62 }
 0x1a5   : > { %1331 = vmatpush3.bf16.msra.mxu0 %v810_v3  ;;  %1395 = vmatpush3.bf16.msra.mxu1 %v810_v3 }
 0x1a8   : > { %852 = vmatmul.mubr.bf16.vlgmr.msra.gmra.mrb[0].mxu0 %v787_v4  ;;  %884 = vmatmul.mubr.bf16.vlgmr.msra.gmra.mrb[0].mxu1 %v795_v5 }
 0x1a9   : > { %859 = vmatprep.mubr.bf16.mxu0 %v790_v6  ;;  %891 = vmatprep.mubr.bf16.mxu1 %v798_v7  ;;  %v1043_v7 = vunpack.c.l.bf16 %v1034_v61 }
 0x1aa   : > { %1010 = vperm.xlu1 %1505, %v932_v12   ;;  %1005 = vperm.xlu0 %1504, %v931_v13  }
 0x1b0   : > { %860 = vmatmul.mubr.bf16.gmra.mrb[4].mxu0 %v789_v14  ;;  %892 = vmatmul.mubr.bf16.gmra.mrb[4].mxu1 %v797_v15 }
 0x1b1   : > { %867 = vmatprep.mubr.bf16.mxu0 %v792_v16  ;;  %899 = vmatprep.mubr.bf16.mxu1 %v800_v17  ;;  %v1044_v17 = vunpack.c.h.bf16 %v1034_v61 }
 0x1b8   : > { %868 = vmatmul.mubr.bf16.gmra.mrb[8].mxu0 %v791_v20  ;;  %900 = vmatmul.mubr.bf16.gmra.mrb[8].mxu1 %v799_v21 }
 0x1b9   : > { %875 = vmatprep.mubr.bf16.mxu0 %v794_v22  ;;  %907 = vmatprep.mubr.bf16.mxu1 %v802_v23 }
 0x1c0   : > { %876 = vmatmul.mubr.bf16.gmra.mrb[12].mxu0 %v793_v24  ;;  %908 = vmatmul.mubr.bf16.gmra.mrb[12].mxu1 %v801_v25 }
 0x20b   : > { %v936_v26 = vpop.permute.xlu0 %935  ;;  %v946_v27 = vpop.permute.xlu1 %945 }
 0x20f   : > { %v941_v28 = vpop.permute.xlu0 %940  ;;  %v1979_v29 = vpop.permute.xlu1 %950 }
 0x213   : > { %v1981_v30 = vpop.permute.xlu0 %955  ;;  %v1986_v31 = vpop.permute.xlu1 %960 }
 0x217   : > { %v1988_v32 = vpop.permute.xlu0 %965  ;;  %v1990_v33 = vpop.permute.xlu1 %970 }
 0x21b   : > { %v976_v34 = vpop.permute.xlu0 %975  ;;  %v981_v55 = vpop.permute.xlu1 %980 }
 0x21f   : > { %v986_v63 = vpop.permute.xlu0 %985  ;;  %v991_v24 = vpop.permute.xlu1 %990 }
 0x223   : > { %v1001_v61 = vpop.permute.xlu1 %1000 }
 0x27b   : > { %v1332_v37 = vpop.f32.mrb[0].mxu0  ;;  %v1356_v38 = vpop.f32.mrb[0].mxu1 }
 0x27c   : > { %v1333_v39 = vpop.f32.mrb[1].mxu0  ;;  %v1357_v40 = vpop.f32.mrb[1].mxu1 }
 0x27d   : > { %v1334_v41 = vadd.f32 %v1333_v39, %v1332_v37  ;;  %v1358_v43 = vadd.f32 %v1357_v40, %v1356_v38  ;;  %v1335_v45 = vpop.f32.mrb[2].mxu0  ;;  %v1359_v46 = vpop.f32.mrb[2].mxu1 }
 0x27e   : > { %v1336_v47 = vpop.f32.mrb[3].mxu0  ;;  %v1360_v49 = vpop.f32.mrb[3].mxu1 }
 0x27f   : > { %v1013_v51 = vmul.f32 %v1334_v41, %v936_v26  ;;  %v1021_v52 = vmul.f32 %v1358_v43, %v976_v34  ;;  %v1337_v53 = vadd.f32 %v1336_v47, %v1335_v45  ;;  %v1361_v54 = vadd.f32 %v1360_v49, %v1359_v46  ;;  %v996_v37 = vpop.permute.xlu0 %995 }
 0x280   : > { %v1053_v46 = vunpack.c.l.bf16 %v1039_v36 }
 0x281   : > { %v1057_v57 = vadd.f32 %v1041_v42, %v1013_v51  ;;  %v1065_v58 = vadd.f32 %v1049_v44, %v1021_v52  ;;  %v1014_v59 = vmul.f32 %v1337_v53, %v941_v28  ;;  %v1022_v60 = vmul.f32 %v1361_v54, %v981_v55 }
 0x282   : > { %v1045_v44 = vunpack.c.l.bf16 %v1035_v35  ;;  %v1046_v53 = vunpack.c.h.bf16 %v1035_v35  ;;  %v1054_v55 = vunpack.c.h.bf16 %v1039_v36 }
 0x283   : > { %v2007_v0 = vadd.f32 %v2002_v56, %v1057_v57  ;;  %v2010_v1 = vadd.f32 %v2002_v56, %v1065_v58  ;;  %v1058_v2 = vadd.f32 %v1042_v48, %v1014_v59  ;;  %v1066_v3 = vadd.f32 %v1050_v50, %v1022_v60  ;;  %v1338_v4 = vpop.f32.mrb[4].mxu0  ;;  %v1362_v5 = vpop.f32.mrb[4].mxu1 }
 0x284   : > { %v1339_v6 = vpop.f32.mrb[5].mxu0  ;;  %v1363_v8 = vpop.f32.mrb[5].mxu1 }
 0x285   : > { %v2013_v10 = vadd.f32 %v2002_v56, %v1058_v2  ;;  %v2016_v11 = vadd.f32 %v2002_v56, %v1066_v3  ;;  %v1340_v12 = vadd.f32 %v1339_v6, %v1338_v4  ;;  %v1364_v13 = vadd.f32 %v1363_v8, %v1362_v5  ;;  %v1341_v14 = vpop.f32.mrb[6].mxu0  ;;  %v1365_v15 = vpop.f32.mrb[6].mxu1  ;;  %v1036_v4 = vld [vmem:[%s1993_s9 + $0x18] sm:$0xff] }
 0x286   : > { %v1342_v16 = vpop.f32.mrb[7].mxu0  ;;  %v1366_v18 = vpop.f32.mrb[7].mxu1  ;;  %v1040_v5 = vld [vmem:[%s1993_s9 + $0x38] sm:$0xff] }
 0x287   : > { %v1015_v20 = vmul.f32 %v1340_v12, %v946_v27  ;;  %v1023_v21 = vmul.f32 %v1364_v13, %v986_v63  ;;  %v1343_v22 = vadd.f32 %v1342_v16, %v1341_v14  ;;  %v1367_v23 = vadd.f32 %v1366_v18, %v1365_v15  ;;  %v1006_v6 = vpop.permute.xlu0 %1005 }
 0x288   : > { %v1047_v15 = vunpack.c.l.bf16 %v1036_v4 }
 0x289   : > { %v1059_v25 = vadd.f32 %v1043_v7, %v1015_v20  ;;  %v1067_v26 = vadd.f32 %v1051_v9, %v1023_v21  ;;  %v1016_v28 = vmul.f32 %v1343_v22, %v1979_v29  ;;  %v1024_v34 = vmul.f32 %v1367_v23, %v991_v24 }
 0x28a   : > { %v1048_v24 = vunpack.c.h.bf16 %v1036_v4 }
 0x28b   : > { %v2022_v38 = vadd.f32 %v2002_v56, %v1059_v25  ;;  %v2025_v39 = vadd.f32 %v2002_v56, %v1067_v26  ;;  %v1060_v40 = vadd.f32 %v1044_v17, %v1016_v28  ;;  %v1068_v27 = vadd.f32 %v1052_v19, %v1024_v34  ;;  %v1344_v41 = vpop.f32.mrb[8].mxu0  ;;  %v1368_v42 = vpop.f32.mrb[8].mxu1 }
 0x28c   : > { %v1345_v43 = vpop.f32.mrb[9].mxu0  ;;  %v1369_v45 = vpop.f32.mrb[9].mxu1  ;;  %v1055_v17 = vunpack.c.l.bf16 %v1040_v5  ;;  %v1056_v26 = vunpack.c.h.bf16 %v1040_v5 }
 0x28d   : > { %v2028_v29 = vadd.f32 %v2002_v56, %v1060_v40  ;;  %v2031_v47 = vadd.f32 %v2002_v56, %v1068_v27  ;;  %v1346_v48 = vadd.f32 %v1345_v43, %v1344_v41  ;;  %v1370_v49 = vadd.f32 %v1369_v45, %v1368_v42  ;;  %v1347_v50 = vpop.f32.mrb[10].mxu0  ;;  %v1371_v51 = vpop.f32.mrb[10].mxu1 }
 0x28e   : > { %v1348_v52 = vpop.f32.mrb[11].mxu0  ;;  %v1372_v54 = vpop.f32.mrb[11].mxu1 }
 0x28f   : > { %v1017_v57 = vmul.f32 %v1346_v48, %v1981_v30  ;;  %v1025_v58 = vmul.f32 %v1370_v49, %v996_v37  ;;  %v1349_v59 = vadd.f32 %v1348_v52, %v1347_v50  ;;  %v1373_v60 = vadd.f32 %v1372_v54, %v1371_v51  ;;  %v1011_v37 = vpop.permute.xlu1 %1010 }
 0x290   : > { %v1103_v50 = vmax.f32 (!%p1305_p9), %v2022_v38, 0.0  ;;  %v1104_v51 = vmax.f32 (!%p1305_p9), %v2028_v29, 0.0 }
 0x291   : > { %v1061_v62 = vadd.f32 %v1045_v44, %v1017_v57  ;;  %v1069_v63 = vadd.f32 %v1053_v46, %v1025_v58  ;;  %v1018_v2 = vmul.f32 %v1349_v59, %v1986_v31  ;;  %v1026_v3 = vmul.f32 %v1373_v60, %v1001_v61 }
 0x292   : > { %v1118_v57 = vpack.c.bf16 (!%p1305_p9), %v1104_v51, %v1103_v50  ;;  %v1109_v58 = vmax.f32 (!%p1305_p9), %v2010_v1, 0.0  ;;  %v1110_v59 = vmax.f32 (!%p1305_p9), %v2016_v11, 0.0 }
 0x293   : > { %v2038_v7 = vadd.f32 %v2002_v56, %v1061_v62  ;;  %v2041_v8 = vadd.f32 %v2002_v56, %v1069_v63  ;;  %v1062_v9 = vadd.f32 %v1046_v53, %v1018_v2  ;;  %v1070_v30 = vadd.f32 %v1054_v55, %v1026_v3  ;;  %v1350_v12 = vpop.f32.mrb[12].mxu0  ;;  %v1374_v13 = vpop.f32.mrb[12].mxu1 }
 0x294   : > { %v1351_v14 = vpop.f32.mrb[13].mxu0  ;;  %v1375_v16 = vpop.f32.mrb[13].mxu1  ;;  %v1111_v62 = vmax.f32 (!%p1305_p9), %v2025_v39, 0.0  ;;  %v1112_v63 = vmax.f32 (!%p1305_p9), %v2031_v47, 0.0  ;;  %1128 = vst [vmem:[%s1126_s14 + $0x8] sm:$0xff] (!%p1305_p9), %v1118_v57  ;;  %v1121_v2 = vpack.c.bf16 (!%p1305_p9), %v1110_v59, %v1109_v58 }
 0x295   : > { %v2044_v31 = vadd.f32 %v2002_v56, %v1062_v9  ;;  %v2047_v18 = vadd.f32 %v2002_v56, %v1070_v30  ;;  %v1352_v19 = vadd.f32 %v1351_v14, %v1350_v12  ;;  %v1376_v20 = vadd.f32 %v1375_v16, %v1374_v13  ;;  %v1353_v21 = vpop.f32.mrb[14].mxu0  ;;  %v1377_v22 = vpop.f32.mrb[14].mxu1 }
 0x296   : > { %v1354_v23 = vpop.f32.mrb[15].mxu0  ;;  %v1378_v25 = vpop.f32.mrb[15].mxu1  ;;  %v1105_v52 = vmax.f32 (!%p1305_p9), %v2038_v7, 0.0  ;;  %v1113_v3 = vmax.f32 (!%p1305_p9), %v2041_v8, 0.0  ;;  %1131 = vst [vmem:[%s1126_s14 + $0x20] sm:$0xff] (!%p1305_p9), %v1121_v2 }
 0x297   : > { %v1019_v28 = vmul.f32 %v1352_v19, %v1988_v32  ;;  %v1027_v34 = vmul.f32 %v1376_v20, %v1006_v6  ;;  %v1355_v35 = vadd.f32 %v1354_v23, %v1353_v21  ;;  %v1379_v36 = vadd.f32 %v1378_v25, %v1377_v22  ;;  %1100 = sbr.rel (%p1305_p9) target bundleno = 676 (0x2a4), region = 116 }
 0x298   : > { %v1101_v32 = vmax.f32 (!%p1305_p9), %v2007_v0, 0.0  ;;  %v1106_v53 = vmax.f32 (!%p1305_p9), %v2044_v31, 0.0  ;;  %v1114_v4 = vmax.f32 (!%p1305_p9), %v2047_v18, 0.0  ;;  %v1122_v6 = vpack.c.bf16 (!%p1305_p9), %v1112_v63, %v1111_v62 }
 0x299   : > { %v1063_v40 = vadd.f32 %v1047_v15, %v1019_v28  ;;  %v1071_v27 = vadd.f32 %v1055_v17, %v1027_v34  ;;  %v1020_v41 = vmul.f32 %v1355_v35, %v1990_v33  ;;  %v1028_v42 = vmul.f32 %v1379_v36, %v1011_v37 }
 0x29a   : > { %v1102_v33 = vmax.f32 (!%p1305_p9), %v2013_v10, 0.0  ;;  %v1119_v60 = vpack.c.bf16 (!%p1305_p9), %v1106_v53, %v1105_v52  ;;  %v1123_v30 = vpack.c.bf16 (!%p1305_p9), %v1114_v4, %v1113_v3  ;;  %1132 = vst [vmem:[%s1126_s14 + $0x28] sm:$0xff] (!%p1305_p9), %v1122_v6 }
 0x29b   : > { %v1086_v43 = vadd.f32 %v2002_v56, %v1063_v40  ;;  %v1094_v44 = vadd.f32 %v2002_v56, %v1071_v27  ;;  %v1064_v45 = vadd.f32 %v1048_v24, %v1020_v41  ;;  %v1072_v46 = vadd.f32 %v1056_v26, %v1028_v42 }
 0x29c   : > { %1129 = vst [vmem:[%s1126_s14 + $0x10] sm:$0xff] (!%p1305_p9), %v1119_v60  ;;  %1133 = vst [vmem:[%s1126_s14 + $0x30] sm:$0xff] (!%p1305_p9), %v1123_v30 }
 0x29d   : > { %v1087_v48 = vadd.f32 %v2002_v56, %v1064_v45  ;;  %v1095_v49 = vadd.f32 %v2002_v56, %v1072_v46  ;;  %v1107_v54 = vmax.f32 (!%p1305_p9), %v1086_v43, 0.0  ;;  %v1117_v56 = vpack.c.bf16 (!%p1305_p9), %v1102_v33, %v1101_v32 }
 0x29e   : > { %v1115_v5 = vmax.f32 %v1094_v44, 0.0 }
 0x29f   : > { %v1108_v55 = vmax.f32 %v1087_v48, 0.0  ;;  %1127 = vst [vmem:[%s1126_s14] sm:$0xff] %v1117_v56  ;;  %v1116_v9 = vmax.f32 %v1095_v49, 0.0 }
 0x2a1   : > { %v1120_v61 = vpack.c.bf16 %v1108_v55, %v1107_v54  ;;  %v1124_v12 = vpack.c.bf16 %v1116_v9, %v1115_v5 }
 0x2a3   : > { %1130 = vst [vmem:[%s1126_s14 + $0x18] sm:$0xff] %v1120_v61  ;;  %1134 = vst [vmem:[%s1126_s14 + $0x38] sm:$0xff] %v1124_v12 }
 0x2a4 PF: > { %p1307_p11 = scmp.ne.s32.totalorder %s1624_s22, 2 }
 0x2a5   : > { %s1139_s18 = scalar_lea.vmem (!%p1307_p11), [#allocation10], %s1935_s8 }
 0x2a6   : > { %1138 = sbr.rel (%p1307_p11) target bundleno = 686 (0x2ae), region = 120  ;;  %1140 = vst [vmem:[%s1139_s18] sm:$0xff] (!%p1307_p11), %v2007_v0  ;;  %1141 = vst [vmem:[%s1139_s18 + $0x8] sm:$0xff] (!%p1307_p11), %v2013_v10 }
 0x2a7   : > { %1142 = vst [vmem:[%s1139_s18 + $0x10] sm:$0xff] (!%p1307_p11), %v2022_v38  ;;  %1143 = vst [vmem:[%s1139_s18 + $0x18] sm:$0xff] (!%p1307_p11), %v2028_v29 }
 0x2a8   : > { %1144 = vst [vmem:[%s1139_s18 + $0x20] sm:$0xff] (!%p1307_p11), %v2038_v7  ;;  %1145 = vst [vmem:[%s1139_s18 + $0x28] sm:$0xff] (!%p1307_p11), %v2044_v31 }
 0x2a9   : > { %1146 = vst [vmem:[%s1139_s18 + $0x30] sm:$0xff] (!%p1307_p11), %v1086_v43  ;;  %1147 = vst [vmem:[%s1139_s18 + $0x38] sm:$0xff] (!%p1307_p11), %v1087_v48 }
 0x2aa   : > { %1148 = vst [vmem:[%s1139_s18 + $0x40] sm:$0xff] (!%p1307_p11), %v2010_v1  ;;  %1149 = vst [vmem:[%s1139_s18 + $0x48] sm:$0xff] (!%p1307_p11), %v2016_v11 }
 0x2ab   : > { %1150 = vst [vmem:[%s1139_s18 + $0x50] sm:$0xff] (!%p1307_p11), %v2025_v39  ;;  %1151 = vst [vmem:[%s1139_s18 + $0x58] sm:$0xff] (!%p1307_p11), %v2031_v47 }
 0x2ac   : > { %1152 = vst [vmem:[%s1139_s18 + $0x60] sm:$0xff] (!%p1307_p11), %v2041_v8  ;;  %1153 = vst [vmem:[%s1139_s18 + $0x68] sm:$0xff] (!%p1307_p11), %v2047_v18 }
 0x2ad   : > { %1154 = vst [vmem:[%s1139_s18 + $0x70] sm:$0xff] %v1094_v44  ;;  %1155 = vst [vmem:[%s1139_s18 + $0x78] sm:$0xff] %v1095_v49 }
 0x2ae PF: > { %p2086_p13 = scmp.eq.s32.totalorder %s1275_s26, 5  ;;  %s1643_s8 = smov [#allocation10]  }
 0x2af   : > { %s1162_s16 = sshll.u32 %s1643_s8, 4  ;;  %s1163_s16 = int_to_ptr.vmem [resolvable:$true] %s1162_s16 }
 0x2b0   : > { %s1536_s17 = scalar_lea.vmem %s1163_s16, 4096  ;;  %p1543_p12 = scmp.lt.s32.totalorder %s1163_s16, %s1163_s16 }
 0x2b1   : > { %p1537_p1 = scmp.ne.s32.totalorder %s1163_s16, %s1536_s17  ;;  %p1544_p0 = scmp.lt.s32.totalorder %s1536_s17, %s1536_s17 }
 0x2b3   : > { %p1538_p2 = pnand %p1537_p1, %p2086_p13  ;;  %p1545_p4 = por %p1544_p0, %p1543_p12 }
 0x2b5   : > { %p1539_p3 = pneg %p1538_p2 }
 0x2b7   : > { %p1546_p10 = pnand %p1545_p4, %p1539_p3 }
 0x2b9   : > { %1549 = shalt.err (!%p1546_p10)
}
 0x2ba   : > { %s1550_s26 = scalar_lea.hbm %s2141_s5, 4096 }
 0x2bb   : > { %p1551_p5 = scmp.ne.s32.totalorder %s2141_s5, %s1550_s26  ;;  %p1556_p7 = scmp.lt.u32.totalorder %s1550_s26, %s2141_s5 }
 0x2bd   : > { %p1552_p6 = pnand %p1551_p5, %p2086_p13 }
 0x2bf   : > { %p1553_p8 = pneg %p1552_p6 }
 0x2c1   : > { %p1558_p9 = pnand %p1556_p7, %p1553_p8 }
 0x2c3   : > { %1561 = shalt.err (!%p1558_p9)
}
 0x2c4   : > { %s1644_s30 = smov 128   ;;  %s1645_s9 = smov 8  }
 0x2c5   : > { %1399 = dma.vmem_to_hbm [thread:$0]  (%p2086_p13), %s1163_s16, 4096, %s2141_s5, [#allocation9], %s1644_s30, %s1644_s30, %s1645_s9  }
 0x2c6   : > { %1603 = dma.done.wait (%p2086_p13), [#allocation9], 4096  }
 0x2c7   : > { %1605 = vsyncadd (%p2086_p13), [#allocation9], 4294963200 }
 0x2c8 PF: > { %s19_s25 = sadd.s32 1, %s1636_s25   ;;  %s2146_s18 = smov %s1612_s19 }
 0x2c9   : > { %p16_p11 = scmp.ge.s32.totalorder %s19_s25, 8   ;;  %s2147_s19 = smov %s1616_s20 }
 0x2ca   : > { %s2148_s20 = smov %s1743_s11  ;;  %s2149_s21 = smov %s1628_s23 }
 0x2cb   : > { %s2150_s22 = smov %s1632_s24  ;;  %s2151_s23 = smov %s2154_s27 }
 0x2cc   : > { %s2152_s24 = smov %s2158_s28  ;;  %18 = sbr.rel (!%p16_p11) target bundleno = 6 (0x6), region = 182 }
 0x2d3   :  { %1178 = vsyncpa [#allocation8], 1 }
 0x2d4   :  { %1180 = vsyncpa [#allocation8 + $0x1], 1 }
 0x2d5   :  { %1181 = vsyncpa [#allocation9], 1 }
 0x2d6   :  { %1183 = vsyncpa [#allocation9 + $0x1], 1 }
 0x2d7   :  { %1184 = vsyncmov [#allocation6] }
 0x2da   :  { %s1185_s14 = vpop.sfrf %1184 }
 0x2db   :  { %p1312_p13 = scmp.ne.s32.totalorder %s1185_s14, 0 }
 0x2dd   :  { %1189 = shalt.err (%p1312_p13)  }
 0x2de   :  { %1191 = vsyncmov [#allocation6 + $0x1] }
 0x2e1   :  { %s1192_s11 = vpop.sfrf %1191 }
 0x2e2   :  { %p1313_p1 = scmp.ne.s32.totalorder %s1192_s11, 0 }
 0x2e4   :  { %1196 = shalt.err (%p1313_p1)  }

</bundles_post_ra>
